<compile_context>
chip_gen: v7x
topology: tpu7x:2x2x1
jax: 0.10.0
libtpu: 0.0.40
codegen_flags: <defaults>
</compile_context>

<pallas_src>
import functools

import jax
import jax.numpy as jnp
from jax.experimental import pallas as pl
from jax.experimental.pallas import tpu as pltpu


def _lstm_head_kernel(ids_ref, gtbl_ref, whh_ref, wlin_ref, blin_ref, out_ref):
    T = ids_ref.shape[0]
    H = whh_ref.shape[0]

    # Per-lane scale so sigmoid gates go through tanh(z/2); torch gate layout
    # is [i | f | g | o] and only the g slice uses tanh(z) directly.
    lane = jax.lax.broadcasted_iota(jnp.int32, (1, 4 * H), 1)
    gate_scale = jnp.where((lane >= 2 * H) & (lane < 3 * H),
                           jnp.float32(1.0), jnp.float32(0.5))

    h = jnp.zeros((1, H), jnp.float32)
    c = jnp.zeros((1, H), jnp.float32)

    # Fully unrolled sequential recurrence (T small & static); h/c live in
    # vregs, the recurrent weight stays resident in VMEM.
    # TODO(synk): if T grows beyond ~32, switch to lax.fori_loop(..., unroll=k)
    # with gates parked in VMEM scratch so vreg live ranges stay bounded.
    # TODO(synk): a further latency win would hold w_hh resident in MXU weight
    # registers across steps (pltpu.matmul_push_rhs / matmul_acc_lhs /
    # matmul_pop, split over v5e's four 128x128 MXUs); kept on jnp.dot here
    # for portability.
    for t in range(T):
        # In-kernel embedding gather: the (vocab, 4H) table already contains
        # embedding @ w_ih.T + b_ih + b_hh, so one row slice gives the full
        # x-contribution to the gates for this token.
        gx = gtbl_ref[pl.ds(ids_ref[t], 1), :]                  # (1, 4H) f32
        g = gx + jnp.dot(h, whh_ref[...],
                         preferred_element_type=jnp.float32)   # (1, 4H) f32
        th = jnp.tanh(g * gate_scale)                           # one wide EUP push
        i_g = 0.5 * (th[:, 0 * H:1 * H] + 1.0)                  # sigmoid(i)
        f_g = 0.5 * (th[:, 1 * H:2 * H] + 1.0)                  # sigmoid(f)
        g_g = th[:, 2 * H:3 * H]                                # tanh(g)
        o_g = 0.5 * (th[:, 3 * H:4 * H] + 1.0)                  # sigmoid(o)
        c = f_g * c + i_g * g_g
        h = o_g * jnp.tanh(c)

    # Head on the final hidden state only (predictions[-1]).  Lane-dense
    # (1, 128) logits; padded lanes carry a -1e30 bias so they vanish from the
    # log-softmax reduction.  NOTE: this padding trick relies on f32 logits /
    # accumulation — do not move the head to a lower-precision accumulate.
    logits = (jnp.dot(h, wlin_ref[...], preferred_element_type=jnp.float32)
              + blin_ref[...])                                  # (1, OPAD) f32
    m = jnp.max(logits, axis=-1, keepdims=True)
    shifted = logits - m
    lse = jnp.log(jnp.sum(jnp.exp(shifted), axis=-1, keepdims=True))
    out_ref[...] = shifted - lse


def prepare_rnn_params(params, *, out_pad=128):
    """One-time layout prep (run at parameter-load time, NOT per call)."""
    H = params["w_hh"].shape[1]
    O = params["b_lin"].shape[-1]
    OPAD = max(out_pad, O)

    bias = (params["b_ih"] + params["b_hh"]).astype(jnp.float32)
    # Fold embedding lookup + input projection + fused bias into one table:
    #   gates_x(token) = embedding[token] @ w_ih.T + b_ih + b_hh
    gates_tbl = (params["embedding"].astype(jnp.float32)
                 @ params["w_ih"].T.astype(jnp.float32)
                 + bias[None, :])                                # (vocab, 4H)

    whh_t = params["w_hh"].T.astype(jnp.float32)                 # (H, 4H)

    wlin_pad = jnp.zeros((H, OPAD), jnp.float32)
    wlin_pad = wlin_pad.at[:, :O].set(params["w_lin"].T.astype(jnp.float32))
    blin_pad = jnp.full((1, OPAD), -1e30, jnp.float32)
    blin_pad = blin_pad.at[:, :O].set(params["b_lin"].astype(jnp.float32)[None, :])

    return {
        "gates_tbl": jax.device_put(gates_tbl),
        "whh_t": jax.device_put(whh_t),
        "wlin_pad": jax.device_put(wlin_pad),
        "blin_pad": jax.device_put(blin_pad),
        "out_size": int(O),
    }


@functools.partial(jax.jit, static_argnames=("out_size",))
def _forward(input_ids, gates_tbl, whh_t, wlin_pad, blin_pad, *, out_size):
    OPAD = blin_pad.shape[-1]
    out = pl.pallas_call(
        _lstm_head_kernel,
        out_shape=jax.ShapeDtypeStruct((1, OPAD), jnp.float32),
        in_specs=[
            pl.BlockSpec(memory_space=pltpu.MemorySpace.SMEM),   # token ids
            pl.BlockSpec(memory_space=pltpu.MemorySpace.VMEM),   # gates table
            pl.BlockSpec(memory_space=pltpu.MemorySpace.VMEM),   # w_hh^T
            pl.BlockSpec(memory_space=pltpu.MemorySpace.VMEM),   # w_lin^T (padded)
            pl.BlockSpec(memory_space=pltpu.MemorySpace.VMEM),   # b_lin (padded)
        ],
        out_specs=pl.BlockSpec(memory_space=pltpu.MemorySpace.VMEM),
    )(input_ids.astype(jnp.int32), gates_tbl, whh_t, wlin_pad, blin_pad)
    # TODO(synk): if batched sequences are ever needed, add a leading batch
    # grid axis marked "parallel" so v7x's second TensorCore is used and MXU
    # row occupancy rises above 1.
    return out[:, :out_size]                                     # (1, 3)


def rnn_module_forward(input_ids, prepared):
    """Pallas implementation of RNNModule.forward(input, initHidden())."""
    return _forward(input_ids,
                    prepared["gates_tbl"], prepared["whh_t"],
                    prepared["wlin_pad"], prepared["blin_pad"],
                    out_size=prepared["out_size"])


def reference_forward(input_ids, params):
    """Pure-JAX f32 reference matching torch semantics."""
    x = params["embedding"][input_ids].astype(jnp.float32)       # (T, H)
    w_ih = params["w_ih"].astype(jnp.float32)
    w_hh = params["w_hh"].astype(jnp.float32)
    w_lin = params["w_lin"].astype(jnp.float32)
    b = (params["b_ih"] + params["b_hh"]).astype(jnp.float32)
    H = params["w_hh"].shape[1]
    h = jnp.zeros((1, H), jnp.float32)
    c = jnp.zeros((1, H), jnp.float32)

    def step(carry, xt):
        h, c = carry
        gates = xt[None, :] @ w_ih.T + h @ w_hh.T + b
        i, f, g, o = jnp.split(gates, 4, axis=-1)
        i = jax.nn.sigmoid(i)
        f = jax.nn.sigmoid(f)
        g = jnp.tanh(g)
        o = jax.nn.sigmoid(o)
        c = f * c + i * g
        h = o * jnp.tanh(c)
        return (h, c), h

    (h, c), _ = jax.lax.scan(step, (h, c), x)
    logits = h @ w_lin.T + params["b_lin"].astype(jnp.float32)
    return jax.nn.log_softmax(logits, axis=-1)                   # (1, 3)


def make_params(key, vocab_size, hidden_size, output_size):
    ks = jax.random.split(key, 7)
    scale = 0.1
    return {
        "embedding": scale * jax.random.normal(ks[0], (vocab_size, hidden_size), jnp.float32),
        "w_ih": scale * jax.random.normal(ks[1], (4 * hidden_size, hidden_size), jnp.float32),
        "w_hh": scale * jax.random.normal(ks[2], (4 * hidden_size, hidden_size), jnp.float32),
        "b_ih": scale * jax.random.normal(ks[3], (4 * hidden_size,), jnp.float32),
        "b_hh": scale * jax.random.normal(ks[4], (4 * hidden_size,), jnp.float32),
        "w_lin": scale * jax.random.normal(ks[5], (output_size, hidden_size), jnp.float32),
        "b_lin": scale * jax.random.normal(ks[6], (output_size,), jnp.float32),
    }


if __name__ == "__main__":
    vocab_size = 64      # token vocabulary (input_size)
    hidden_size = 128    # LSTM hidden size (small, lane-aligned)
    output_size = 3
    seq_len = 8

    key = jax.random.PRNGKey(0)
    pkey, ikey = jax.random.split(key)
    params = make_params(pkey, vocab_size, hidden_size, output_size)
    input_ids = jax.random.randint(ikey, (seq_len,), 0, vocab_size, dtype=jnp.int32)

    # One-time layout prep (kept off the per-call path by design).
    prepared = prepare_rnn_params(params)

    out = jax.block_until_ready(rnn_module_forward(input_ids, prepared))
    assert out.shape == (1, output_size), out.shape

    # Check vs the full-f32 torch-semantics reference.
    ref = jax.block_until_ready(reference_forward(input_ids, params))
    assert jnp.allclose(out, ref, atol=2e-2, rtol=2e-2), (out, ref)
    # Sanity: valid log-probabilities over the 3 classes.
    assert jnp.allclose(jnp.sum(jnp.exp(out)), 1.0, atol=1e-3)

    print("KERNEL_OK")
</pallas_src>

<mosaic_0001>
module attributes {stable_mosaic.version = 11 : i64} {
  func.func @_lstm_head_kernel(%arg0: memref<8xi32, #tpu.memory_space<smem>>, %arg1: memref<64x512xf32, #tpu.memory_space<vmem>>, %arg2: memref<128x512xf32, #tpu.memory_space<vmem>>, %arg3: memref<128x128xf32, #tpu.memory_space<vmem>>, %arg4: memref<1x128xf32, #tpu.memory_space<vmem>>, %arg5: memref<1x128xf32, #tpu.memory_space<vmem>>) attributes {dimension_semantics = [], scalar_prefetch = 0 : i64, scratch_operands = 0 : i64, tpu.core_type = #tpu.core_type<tc>} {
    %0 = tpu.iota {dimensions = array<i32: 1>} : vector<1x512xi32>
    %c256_i32 = arith.constant 256 : i32
    %1 = vector.broadcast %c256_i32 : i32 to vector<1x512xi32>
    %2 = arith.cmpi sge, %0, %1 : vector<1x512xi32>
    %c384_i32 = arith.constant 384 : i32
    %3 = vector.broadcast %c384_i32 : i32 to vector<1x512xi32>
    %4 = arith.cmpi slt, %0, %3 : vector<1x512xi32>
    %5 = arith.andi %2, %4 : vector<1x512xi1>
    %cst = arith.constant 1.000000e+00 : f32
    %cst_0 = arith.constant 5.000000e-01 : f32
    %6 = vector.broadcast %cst : f32 to vector<1x512xf32>
    %7 = vector.broadcast %cst_0 : f32 to vector<1x512xf32>
    %8 = arith.select %5, %6, %7 : vector<1x512xi1>, vector<1x512xf32>
    %cst_1 = arith.constant 0.000000e+00 : f32
    %9 = vector.broadcast %cst_1 : f32 to vector<1x128xf32>
    %cst_2 = arith.constant 0.000000e+00 : f32
    %10 = vector.broadcast %cst_2 : f32 to vector<1x128xf32>
    %c0 = arith.constant 0 : index
    %11 = memref.load %arg0[%c0] : memref<8xi32, #tpu.memory_space<smem>>
    %12 = arith.index_cast %11 : i32 to index
    %c0_3 = arith.constant 0 : index
    %13 = vector.load %arg1[%12, %c0_3] : memref<64x512xf32, #tpu.memory_space<vmem>>, vector<1x512xf32>
    %c0_4 = arith.constant 0 : index
    %c0_5 = arith.constant 0 : index
    %14 = vector.load %arg2[%c0_4, %c0_5] : memref<128x512xf32, #tpu.memory_space<vmem>>, vector<128x512xf32>
    %cst_6 = arith.constant dense<0.000000e+00> : vector<1x512xf32>
    %15 = tpu.matmul %9, %14, %cst_6 {dimension_numbers = #tpu.dot_dimension_numbers<[1], [0], [0], [1], [0, 0, 1, 1], [], []>} : vector<1x128xf32>, vector<128x512xf32>, vector<1x512xf32> -> vector<1x512xf32>
    %16 = arith.addf %13, %15 : vector<1x512xf32>
    %17 = arith.mulf %16, %8 : vector<1x512xf32>
    %18 = math.tanh %17 : vector<1x512xf32>
    %19 = vector.extract_strided_slice %18 {offsets = [0, 0], sizes = [1, 128], strides = [1, 1]} : vector<1x512xf32> to vector<1x128xf32>
    %cst_7 = arith.constant 1.000000e+00 : f32
    %20 = vector.broadcast %cst_7 : f32 to vector<1x128xf32>
    %21 = arith.addf %19, %20 : vector<1x128xf32>
    %cst_8 = arith.constant 5.000000e-01 : f32
    %22 = vector.broadcast %cst_8 : f32 to vector<1x128xf32>
    %23 = arith.mulf %22, %21 : vector<1x128xf32>
    %24 = vector.extract_strided_slice %18 {offsets = [0, 128], sizes = [1, 128], strides = [1, 1]} : vector<1x512xf32> to vector<1x128xf32>
    %cst_9 = arith.constant 1.000000e+00 : f32
    %25 = vector.broadcast %cst_9 : f32 to vector<1x128xf32>
    %26 = arith.addf %24, %25 : vector<1x128xf32>
    %cst_10 = arith.constant 5.000000e-01 : f32
    %27 = vector.broadcast %cst_10 : f32 to vector<1x128xf32>
    %28 = arith.mulf %27, %26 : vector<1x128xf32>
    %29 = vector.extract_strided_slice %18 {offsets = [0, 256], sizes = [1, 128], strides = [1, 1]} : vector<1x512xf32> to vector<1x128xf32>
    %30 = vector.extract_strided_slice %18 {offsets = [0, 384], sizes = [1, 128], strides = [1, 1]} : vector<1x512xf32> to vector<1x128xf32>
    %cst_11 = arith.constant 1.000000e+00 : f32
    %31 = vector.broadcast %cst_11 : f32 to vector<1x128xf32>
    %32 = arith.addf %30, %31 : vector<1x128xf32>
    %cst_12 = arith.constant 5.000000e-01 : f32
    %33 = vector.broadcast %cst_12 : f32 to vector<1x128xf32>
    %34 = arith.mulf %33, %32 : vector<1x128xf32>
    %35 = arith.mulf %28, %10 : vector<1x128xf32>
    %36 = arith.mulf %23, %29 : vector<1x128xf32>
    %37 = arith.addf %35, %36 : vector<1x128xf32>
    %38 = math.tanh %37 : vector<1x128xf32>
    %39 = arith.mulf %34, %38 : vector<1x128xf32>
    %c1 = arith.constant 1 : index
    %40 = memref.load %arg0[%c1] : memref<8xi32, #tpu.memory_space<smem>>
    %41 = arith.index_cast %40 : i32 to index
    %c0_13 = arith.constant 0 : index
    %42 = vector.load %arg1[%41, %c0_13] : memref<64x512xf32, #tpu.memory_space<vmem>>, vector<1x512xf32>
    %c0_14 = arith.constant 0 : index
    %c0_15 = arith.constant 0 : index
    %43 = vector.load %arg2[%c0_14, %c0_15] : memref<128x512xf32, #tpu.memory_space<vmem>>, vector<128x512xf32>
    %cst_16 = arith.constant dense<0.000000e+00> : vector<1x512xf32>
    %44 = tpu.matmul %39, %43, %cst_16 {dimension_numbers = #tpu.dot_dimension_numbers<[1], [0], [0], [1], [0, 0, 1, 1], [], []>} : vector<1x128xf32>, vector<128x512xf32>, vector<1x512xf32> -> vector<1x512xf32>
    %45 = arith.addf %42, %44 : vector<1x512xf32>
    %46 = arith.mulf %45, %8 : vector<1x512xf32>
    %47 = math.tanh %46 : vector<1x512xf32>
    %48 = vector.extract_strided_slice %47 {offsets = [0, 0], sizes = [1, 128], strides = [1, 1]} : vector<1x512xf32> to vector<1x128xf32>
    %cst_17 = arith.constant 1.000000e+00 : f32
    %49 = vector.broadcast %cst_17 : f32 to vector<1x128xf32>
    %50 = arith.addf %48, %49 : vector<1x128xf32>
    %cst_18 = arith.constant 5.000000e-01 : f32
    %51 = vector.broadcast %cst_18 : f32 to vector<1x128xf32>
    %52 = arith.mulf %51, %50 : vector<1x128xf32>
    %53 = vector.extract_strided_slice %47 {offsets = [0, 128], sizes = [1, 128], strides = [1, 1]} : vector<1x512xf32> to vector<1x128xf32>
    %cst_19 = arith.constant 1.000000e+00 : f32
    %54 = vector.broadcast %cst_19 : f32 to vector<1x128xf32>
    %55 = arith.addf %53, %54 : vector<1x128xf32>
    %cst_20 = arith.constant 5.000000e-01 : f32
    %56 = vector.broadcast %cst_20 : f32 to vector<1x128xf32>
    %57 = arith.mulf %56, %55 : vector<1x128xf32>
    %58 = vector.extract_strided_slice %47 {offsets = [0, 256], sizes = [1, 128], strides = [1, 1]} : vector<1x512xf32> to vector<1x128xf32>
    %59 = vector.extract_strided_slice %47 {offsets = [0, 384], sizes = [1, 128], strides = [1, 1]} : vector<1x512xf32> to vector<1x128xf32>
    %cst_21 = arith.constant 1.000000e+00 : f32
    %60 = vector.broadcast %cst_21 : f32 to vector<1x128xf32>
    %61 = arith.addf %59, %60 : vector<1x128xf32>
    %cst_22 = arith.constant 5.000000e-01 : f32
    %62 = vector.broadcast %cst_22 : f32 to vector<1x128xf32>
    %63 = arith.mulf %62, %61 : vector<1x128xf32>
    %64 = arith.mulf %57, %37 : vector<1x128xf32>
    %65 = arith.mulf %52, %58 : vector<1x128xf32>
    %66 = arith.addf %64, %65 : vector<1x128xf32>
    %67 = math.tanh %66 : vector<1x128xf32>
    %68 = arith.mulf %63, %67 : vector<1x128xf32>
    %c2 = arith.constant 2 : index
    %69 = memref.load %arg0[%c2] : memref<8xi32, #tpu.memory_space<smem>>
    %70 = arith.index_cast %69 : i32 to index
    %c0_23 = arith.constant 0 : index
    %71 = vector.load %arg1[%70, %c0_23] : memref<64x512xf32, #tpu.memory_space<vmem>>, vector<1x512xf32>
    %c0_24 = arith.constant 0 : index
    %c0_25 = arith.constant 0 : index
    %72 = vector.load %arg2[%c0_24, %c0_25] : memref<128x512xf32, #tpu.memory_space<vmem>>, vector<128x512xf32>
    %cst_26 = arith.constant dense<0.000000e+00> : vector<1x512xf32>
    %73 = tpu.matmul %68, %72, %cst_26 {dimension_numbers = #tpu.dot_dimension_numbers<[1], [0], [0], [1], [0, 0, 1, 1], [], []>} : vector<1x128xf32>, vector<128x512xf32>, vector<1x512xf32> -> vector<1x512xf32>
    %74 = arith.addf %71, %73 : vector<1x512xf32>
    %75 = arith.mulf %74, %8 : vector<1x512xf32>
    %76 = math.tanh %75 : vector<1x512xf32>
    %77 = vector.extract_strided_slice %76 {offsets = [0, 0], sizes = [1, 128], strides = [1, 1]} : vector<1x512xf32> to vector<1x128xf32>
    %cst_27 = arith.constant 1.000000e+00 : f32
    %78 = vector.broadcast %cst_27 : f32 to vector<1x128xf32>
    %79 = arith.addf %77, %78 : vector<1x128xf32>
    %cst_28 = arith.constant 5.000000e-01 : f32
    %80 = vector.broadcast %cst_28 : f32 to vector<1x128xf32>
    %81 = arith.mulf %80, %79 : vector<1x128xf32>
    %82 = vector.extract_strided_slice %76 {offsets = [0, 128], sizes = [1, 128], strides = [1, 1]} : vector<1x512xf32> to vector<1x128xf32>
    %cst_29 = arith.constant 1.000000e+00 : f32
    %83 = vector.broadcast %cst_29 : f32 to vector<1x128xf32>
    %84 = arith.addf %82, %83 : vector<1x128xf32>
    %cst_30 = arith.constant 5.000000e-01 : f32
    %85 = vector.broadcast %cst_30 : f32 to vector<1x128xf32>
    %86 = arith.mulf %85, %84 : vector<1x128xf32>
    %87 = vector.extract_strided_slice %76 {offsets = [0, 256], sizes = [1, 128], strides = [1, 1]} : vector<1x512xf32> to vector<1x128xf32>
    %88 = vector.extract_strided_slice %76 {offsets = [0, 384], sizes = [1, 128], strides = [1, 1]} : vector<1x512xf32> to vector<1x128xf32>
    %cst_31 = arith.constant 1.000000e+00 : f32
    %89 = vector.broadcast %cst_31 : f32 to vector<1x128xf32>
    %90 = arith.addf %88, %89 : vector<1x128xf32>
    %cst_32 = arith.constant 5.000000e-01 : f32
    %91 = vector.broadcast %cst_32 : f32 to vector<1x128xf32>
    %92 = arith.mulf %91, %90 : vector<1x128xf32>
    %93 = arith.mulf %86, %66 : vector<1x128xf32>
    %94 = arith.mulf %81, %87 : vector<1x128xf32>
    %95 = arith.addf %93, %94 : vector<1x128xf32>
    %96 = math.tanh %95 : vector<1x128xf32>
    %97 = arith.mulf %92, %96 : vector<1x128xf32>
    %c3 = arith.constant 3 : index
    %98 = memref.load %arg0[%c3] : memref<8xi32, #tpu.memory_space<smem>>
    %99 = arith.index_cast %98 : i32 to index
    %c0_33 = arith.constant 0 : index
    %100 = vector.load %arg1[%99, %c0_33] : memref<64x512xf32, #tpu.memory_space<vmem>>, vector<1x512xf32>
    %c0_34 = arith.constant 0 : index
    %c0_35 = arith.constant 0 : index
    %101 = vector.load %arg2[%c0_34, %c0_35] : memref<128x512xf32, #tpu.memory_space<vmem>>, vector<128x512xf32>
    %cst_36 = arith.constant dense<0.000000e+00> : vector<1x512xf32>
    %102 = tpu.matmul %97, %101, %cst_36 {dimension_numbers = #tpu.dot_dimension_numbers<[1], [0], [0], [1], [0, 0, 1, 1], [], []>} : vector<1x128xf32>, vector<128x512xf32>, vector<1x512xf32> -> vector<1x512xf32>
    %103 = arith.addf %100, %102 : vector<1x512xf32>
    %104 = arith.mulf %103, %8 : vector<1x512xf32>
    %105 = math.tanh %104 : vector<1x512xf32>
    %106 = vector.extract_strided_slice %105 {offsets = [0, 0], sizes = [1, 128], strides = [1, 1]} : vector<1x512xf32> to vector<1x128xf32>
    %cst_37 = arith.constant 1.000000e+00 : f32
    %107 = vector.broadcast %cst_37 : f32 to vector<1x128xf32>
    %108 = arith.addf %106, %107 : vector<1x128xf32>
    %cst_38 = arith.constant 5.000000e-01 : f32
    %109 = vector.broadcast %cst_38 : f32 to vector<1x128xf32>
    %110 = arith.mulf %109, %108 : vector<1x128xf32>
    %111 = vector.extract_strided_slice %105 {offsets = [0, 128], sizes = [1, 128], strides = [1, 1]} : vector<1x512xf32> to vector<1x128xf32>
    %cst_39 = arith.constant 1.000000e+00 : f32
    %112 = vector.broadcast %cst_39 : f32 to vector<1x128xf32>
    %113 = arith.addf %111, %112 : vector<1x128xf32>
    %cst_40 = arith.constant 5.000000e-01 : f32
    %114 = vector.broadcast %cst_40 : f32 to vector<1x128xf32>
    %115 = arith.mulf %114, %113 : vector<1x128xf32>
    %116 = vector.extract_strided_slice %105 {offsets = [0, 256], sizes = [1, 128], strides = [1, 1]} : vector<1x512xf32> to vector<1x128xf32>
    %117 = vector.extract_strided_slice %105 {offsets = [0, 384], sizes = [1, 128], strides = [1, 1]} : vector<1x512xf32> to vector<1x128xf32>
    %cst_41 = arith.constant 1.000000e+00 : f32
    %118 = vector.broadcast %cst_41 : f32 to vector<1x128xf32>
    %119 = arith.addf %117, %118 : vector<1x128xf32>
    %cst_42 = arith.constant 5.000000e-01 : f32
    %120 = vector.broadcast %cst_42 : f32 to vector<1x128xf32>
    %121 = arith.mulf %120, %119 : vector<1x128xf32>
    %122 = arith.mulf %115, %95 : vector<1x128xf32>
    %123 = arith.mulf %110, %116 : vector<1x128xf32>
    %124 = arith.addf %122, %123 : vector<1x128xf32>
    %125 = math.tanh %124 : vector<1x128xf32>
    %126 = arith.mulf %121, %125 : vector<1x128xf32>
    %c4 = arith.constant 4 : index
    %127 = memref.load %arg0[%c4] : memref<8xi32, #tpu.memory_space<smem>>
    %128 = arith.index_cast %127 : i32 to index
    %c0_43 = arith.constant 0 : index
    %129 = vector.load %arg1[%128, %c0_43] : memref<64x512xf32, #tpu.memory_space<vmem>>, vector<1x512xf32>
    %c0_44 = arith.constant 0 : index
    %c0_45 = arith.constant 0 : index
    %130 = vector.load %arg2[%c0_44, %c0_45] : memref<128x512xf32, #tpu.memory_space<vmem>>, vector<128x512xf32>
    %cst_46 = arith.constant dense<0.000000e+00> : vector<1x512xf32>
    %131 = tpu.matmul %126, %130, %cst_46 {dimension_numbers = #tpu.dot_dimension_numbers<[1], [0], [0], [1], [0, 0, 1, 1], [], []>} : vector<1x128xf32>, vector<128x512xf32>, vector<1x512xf32> -> vector<1x512xf32>
    %132 = arith.addf %129, %131 : vector<1x512xf32>
    %133 = arith.mulf %132, %8 : vector<1x512xf32>
    %134 = math.tanh %133 : vector<1x512xf32>
    %135 = vector.extract_strided_slice %134 {offsets = [0, 0], sizes = [1, 128], strides = [1, 1]} : vector<1x512xf32> to vector<1x128xf32>
    %cst_47 = arith.constant 1.000000e+00 : f32
    %136 = vector.broadcast %cst_47 : f32 to vector<1x128xf32>
    %137 = arith.addf %135, %136 : vector<1x128xf32>
    %cst_48 = arith.constant 5.000000e-01 : f32
    %138 = vector.broadcast %cst_48 : f32 to vector<1x128xf32>
    %139 = arith.mulf %138, %137 : vector<1x128xf32>
    %140 = vector.extract_strided_slice %134 {offsets = [0, 128], sizes = [1, 128], strides = [1, 1]} : vector<1x512xf32> to vector<1x128xf32>
    %cst_49 = arith.constant 1.000000e+00 : f32
    %141 = vector.broadcast %cst_49 : f32 to vector<1x128xf32>
    %142 = arith.addf %140, %141 : vector<1x128xf32>
    %cst_50 = arith.constant 5.000000e-01 : f32
    %143 = vector.broadcast %cst_50 : f32 to vector<1x128xf32>
    %144 = arith.mulf %143, %142 : vector<1x128xf32>
    %145 = vector.extract_strided_slice %134 {offsets = [0, 256], sizes = [1, 128], strides = [1, 1]} : vector<1x512xf32> to vector<1x128xf32>
    %146 = vector.extract_strided_slice %134 {offsets = [0, 384], sizes = [1, 128], strides = [1, 1]} : vector<1x512xf32> to vector<1x128xf32>
    %cst_51 = arith.constant 1.000000e+00 : f32
    %147 = vector.broadcast %cst_51 : f32 to vector<1x128xf32>
    %148 = arith.addf %146, %147 : vector<1x128xf32>
    %cst_52 = arith.constant 5.000000e-01 : f32
    %149 = vector.broadcast %cst_52 : f32 to vector<1x128xf32>
    %150 = arith.mulf %149, %148 : vector<1x128xf32>
    %151 = arith.mulf %144, %124 : vector<1x128xf32>
    %152 = arith.mulf %139, %145 : vector<1x128xf32>
    %153 = arith.addf %151, %152 : vector<1x128xf32>
    %154 = math.tanh %153 : vector<1x128xf32>
    %155 = arith.mulf %150, %154 : vector<1x128xf32>
    %c5 = arith.constant 5 : index
    %156 = memref.load %arg0[%c5] : memref<8xi32, #tpu.memory_space<smem>>
    %157 = arith.index_cast %156 : i32 to index
    %c0_53 = arith.constant 0 : index
    %158 = vector.load %arg1[%157, %c0_53] : memref<64x512xf32, #tpu.memory_space<vmem>>, vector<1x512xf32>
    %c0_54 = arith.constant 0 : index
    %c0_55 = arith.constant 0 : index
    %159 = vector.load %arg2[%c0_54, %c0_55] : memref<128x512xf32, #tpu.memory_space<vmem>>, vector<128x512xf32>
    %cst_56 = arith.constant dense<0.000000e+00> : vector<1x512xf32>
    %160 = tpu.matmul %155, %159, %cst_56 {dimension_numbers = #tpu.dot_dimension_numbers<[1], [0], [0], [1], [0, 0, 1, 1], [], []>} : vector<1x128xf32>, vector<128x512xf32>, vector<1x512xf32> -> vector<1x512xf32>
    %161 = arith.addf %158, %160 : vector<1x512xf32>
    %162 = arith.mulf %161, %8 : vector<1x512xf32>
    %163 = math.tanh %162 : vector<1x512xf32>
    %164 = vector.extract_strided_slice %163 {offsets = [0, 0], sizes = [1, 128], strides = [1, 1]} : vector<1x512xf32> to vector<1x128xf32>
    %cst_57 = arith.constant 1.000000e+00 : f32
    %165 = vector.broadcast %cst_57 : f32 to vector<1x128xf32>
    %166 = arith.addf %164, %165 : vector<1x128xf32>
    %cst_58 = arith.constant 5.000000e-01 : f32
    %167 = vector.broadcast %cst_58 : f32 to vector<1x128xf32>
    %168 = arith.mulf %167, %166 : vector<1x128xf32>
    %169 = vector.extract_strided_slice %163 {offsets = [0, 128], sizes = [1, 128], strides = [1, 1]} : vector<1x512xf32> to vector<1x128xf32>
    %cst_59 = arith.constant 1.000000e+00 : f32
    %170 = vector.broadcast %cst_59 : f32 to vector<1x128xf32>
    %171 = arith.addf %169, %170 : vector<1x128xf32>
    %cst_60 = arith.constant 5.000000e-01 : f32
    %172 = vector.broadcast %cst_60 : f32 to vector<1x128xf32>
    %173 = arith.mulf %172, %171 : vector<1x128xf32>
    %174 = vector.extract_strided_slice %163 {offsets = [0, 256], sizes = [1, 128], strides = [1, 1]} : vector<1x512xf32> to vector<1x128xf32>
    %175 = vector.extract_strided_slice %163 {offsets = [0, 384], sizes = [1, 128], strides = [1, 1]} : vector<1x512xf32> to vector<1x128xf32>
    %cst_61 = arith.constant 1.000000e+00 : f32
    %176 = vector.broadcast %cst_61 : f32 to vector<1x128xf32>
    %177 = arith.addf %175, %176 : vector<1x128xf32>
    %cst_62 = arith.constant 5.000000e-01 : f32
    %178 = vector.broadcast %cst_62 : f32 to vector<1x128xf32>
    %179 = arith.mulf %178, %177 : vector<1x128xf32>
    %180 = arith.mulf %173, %153 : vector<1x128xf32>
    %181 = arith.mulf %168, %174 : vector<1x128xf32>
    %182 = arith.addf %180, %181 : vector<1x128xf32>
    %183 = math.tanh %182 : vector<1x128xf32>
    %184 = arith.mulf %179, %183 : vector<1x128xf32>
    %c6 = arith.constant 6 : index
    %185 = memref.load %arg0[%c6] : memref<8xi32, #tpu.memory_space<smem>>
    %186 = arith.index_cast %185 : i32 to index
    %c0_63 = arith.constant 0 : index
    %187 = vector.load %arg1[%186, %c0_63] : memref<64x512xf32, #tpu.memory_space<vmem>>, vector<1x512xf32>
    %c0_64 = arith.constant 0 : index
    %c0_65 = arith.constant 0 : index
    %188 = vector.load %arg2[%c0_64, %c0_65] : memref<128x512xf32, #tpu.memory_space<vmem>>, vector<128x512xf32>
    %cst_66 = arith.constant dense<0.000000e+00> : vector<1x512xf32>
    %189 = tpu.matmul %184, %188, %cst_66 {dimension_numbers = #tpu.dot_dimension_numbers<[1], [0], [0], [1], [0, 0, 1, 1], [], []>} : vector<1x128xf32>, vector<128x512xf32>, vector<1x512xf32> -> vector<1x512xf32>
    %190 = arith.addf %187, %189 : vector<1x512xf32>
    %191 = arith.mulf %190, %8 : vector<1x512xf32>
    %192 = math.tanh %191 : vector<1x512xf32>
    %193 = vector.extract_strided_slice %192 {offsets = [0, 0], sizes = [1, 128], strides = [1, 1]} : vector<1x512xf32> to vector<1x128xf32>
    %cst_67 = arith.constant 1.000000e+00 : f32
    %194 = vector.broadcast %cst_67 : f32 to vector<1x128xf32>
    %195 = arith.addf %193, %194 : vector<1x128xf32>
    %cst_68 = arith.constant 5.000000e-01 : f32
    %196 = vector.broadcast %cst_68 : f32 to vector<1x128xf32>
    %197 = arith.mulf %196, %195 : vector<1x128xf32>
    %198 = vector.extract_strided_slice %192 {offsets = [0, 128], sizes = [1, 128], strides = [1, 1]} : vector<1x512xf32> to vector<1x128xf32>
    %cst_69 = arith.constant 1.000000e+00 : f32
    %199 = vector.broadcast %cst_69 : f32 to vector<1x128xf32>
    %200 = arith.addf %198, %199 : vector<1x128xf32>
    %cst_70 = arith.constant 5.000000e-01 : f32
    %201 = vector.broadcast %cst_70 : f32 to vector<1x128xf32>
    %202 = arith.mulf %201, %200 : vector<1x128xf32>
    %203 = vector.extract_strided_slice %192 {offsets = [0, 256], sizes = [1, 128], strides = [1, 1]} : vector<1x512xf32> to vector<1x128xf32>
    %204 = vector.extract_strided_slice %192 {offsets = [0, 384], sizes = [1, 128], strides = [1, 1]} : vector<1x512xf32> to vector<1x128xf32>
    %cst_71 = arith.constant 1.000000e+00 : f32
    %205 = vector.broadcast %cst_71 : f32 to vector<1x128xf32>
    %206 = arith.addf %204, %205 : vector<1x128xf32>
    %cst_72 = arith.constant 5.000000e-01 : f32
    %207 = vector.broadcast %cst_72 : f32 to vector<1x128xf32>
    %208 = arith.mulf %207, %206 : vector<1x128xf32>
    %209 = arith.mulf %202, %182 : vector<1x128xf32>
    %210 = arith.mulf %197, %203 : vector<1x128xf32>
    %211 = arith.addf %209, %210 : vector<1x128xf32>
    %212 = math.tanh %211 : vector<1x128xf32>
    %213 = arith.mulf %208, %212 : vector<1x128xf32>
    %c7 = arith.constant 7 : index
    %214 = memref.load %arg0[%c7] : memref<8xi32, #tpu.memory_space<smem>>
    %215 = arith.index_cast %214 : i32 to index
    %c0_73 = arith.constant 0 : index
    %216 = vector.load %arg1[%215, %c0_73] : memref<64x512xf32, #tpu.memory_space<vmem>>, vector<1x512xf32>
    %c0_74 = arith.constant 0 : index
    %c0_75 = arith.constant 0 : index
    %217 = vector.load %arg2[%c0_74, %c0_75] : memref<128x512xf32, #tpu.memory_space<vmem>>, vector<128x512xf32>
    %cst_76 = arith.constant dense<0.000000e+00> : vector<1x512xf32>
    %218 = tpu.matmul %213, %217, %cst_76 {dimension_numbers = #tpu.dot_dimension_numbers<[1], [0], [0], [1], [0, 0, 1, 1], [], []>} : vector<1x128xf32>, vector<128x512xf32>, vector<1x512xf32> -> vector<1x512xf32>
    %219 = arith.addf %216, %218 : vector<1x512xf32>
    %220 = arith.mulf %219, %8 : vector<1x512xf32>
    %221 = math.tanh %220 : vector<1x512xf32>
    %222 = vector.extract_strided_slice %221 {offsets = [0, 0], sizes = [1, 128], strides = [1, 1]} : vector<1x512xf32> to vector<1x128xf32>
    %cst_77 = arith.constant 1.000000e+00 : f32
    %223 = vector.broadcast %cst_77 : f32 to vector<1x128xf32>
    %224 = arith.addf %222, %223 : vector<1x128xf32>
    %cst_78 = arith.constant 5.000000e-01 : f32
    %225 = vector.broadcast %cst_78 : f32 to vector<1x128xf32>
    %226 = arith.mulf %225, %224 : vector<1x128xf32>
    %227 = vector.extract_strided_slice %221 {offsets = [0, 128], sizes = [1, 128], strides = [1, 1]} : vector<1x512xf32> to vector<1x128xf32>
    %cst_79 = arith.constant 1.000000e+00 : f32
    %228 = vector.broadcast %cst_79 : f32 to vector<1x128xf32>
    %229 = arith.addf %227, %228 : vector<1x128xf32>
    %cst_80 = arith.constant 5.000000e-01 : f32
    %230 = vector.broadcast %cst_80 : f32 to vector<1x128xf32>
    %231 = arith.mulf %230, %229 : vector<1x128xf32>
    %232 = vector.extract_strided_slice %221 {offsets = [0, 256], sizes = [1, 128], strides = [1, 1]} : vector<1x512xf32> to vector<1x128xf32>
    %233 = vector.extract_strided_slice %221 {offsets = [0, 384], sizes = [1, 128], strides = [1, 1]} : vector<1x512xf32> to vector<1x128xf32>
    %cst_81 = arith.constant 1.000000e+00 : f32
    %234 = vector.broadcast %cst_81 : f32 to vector<1x128xf32>
    %235 = arith.addf %233, %234 : vector<1x128xf32>
    %cst_82 = arith.constant 5.000000e-01 : f32
    %236 = vector.broadcast %cst_82 : f32 to vector<1x128xf32>
    %237 = arith.mulf %236, %235 : vector<1x128xf32>
    %238 = arith.mulf %231, %211 : vector<1x128xf32>
    %239 = arith.mulf %226, %232 : vector<1x128xf32>
    %240 = arith.addf %238, %239 : vector<1x128xf32>
    %241 = math.tanh %240 : vector<1x128xf32>
    %242 = arith.mulf %237, %241 : vector<1x128xf32>
    %c0_83 = arith.constant 0 : index
    %c0_84 = arith.constant 0 : index
    %243 = vector.load %arg3[%c0_83, %c0_84] : memref<128x128xf32, #tpu.memory_space<vmem>>, vector<128x128xf32>
    %cst_85 = arith.constant dense<0.000000e+00> : vector<1x128xf32>
    %244 = tpu.matmul %242, %243, %cst_85 {dimension_numbers = #tpu.dot_dimension_numbers<[1], [0], [0], [1], [0, 0, 1, 1], [], []>} : vector<1x128xf32>, vector<128x128xf32>, vector<1x128xf32> -> vector<1x128xf32>
    %c0_86 = arith.constant 0 : index
    %c0_87 = arith.constant 0 : index
    %245 = vector.load %arg4[%c0_86, %c0_87] : memref<1x128xf32, #tpu.memory_space<vmem>>, vector<1x128xf32>
    %246 = arith.addf %244, %245 : vector<1x128xf32>
    %cst_88 = arith.constant dense<0xFF800000> : vector<1xf32>
    %247 = vector.multi_reduction <maximumf>, %246, %cst_88 [1] : vector<1x128xf32> to vector<1xf32>
    %248 = vector.shape_cast %247 : vector<1xf32> to vector<1x1xf32>
    %249 = vector.broadcast %248 : vector<1x1xf32> to vector<1x128xf32>
    %250 = arith.subf %246, %249 : vector<1x128xf32>
    %251 = math.exp %250 : vector<1x128xf32>
    %cst_89 = arith.constant dense<0.000000e+00> : vector<1xf32>
    %252 = vector.multi_reduction <add>, %251, %cst_89 [1] : vector<1x128xf32> to vector<1xf32>
    %253 = vector.shape_cast %252 : vector<1xf32> to vector<1x1xf32>
    %254 = math.log %253 : vector<1x1xf32>
    %255 = vector.broadcast %254 : vector<1x1xf32> to vector<1x128xf32>
    %256 = arith.subf %250, %255 : vector<1x128xf32>
    %c0_90 = arith.constant 0 : index
    %c0_91 = arith.constant 0 : index
    %257 = vector.load %arg5[%c0_90, %c0_91] : memref<1x128xf32, #tpu.memory_space<vmem>>, vector<1x128xf32>
    tpu.vector_store %arg5[%c0_90, %c0_91], %256 {strides = array<i32>} : memref<1x128xf32, #tpu.memory_space<vmem>>, vector<1x128xf32>,
    return
  }
}

</mosaic_0001>

<bundles_post_ra>
// kernel: _forward.1
= control target key start
LH: loop header
LB: loop body
LE: loop exit
PB: predicated region body
PF: predicated region fallthrough
CT: control target
= control target key end

     0   :  { %10 = vsyncpa [#allocation5], 0  ;;  %s3235_s0 = inlined_call_operand.hbm [shape: s32[8], index: 0, kind: input, shape index: {}]   ;;  %s3236_s1 = inlined_call_operand.hbm [shape: f32[64,512], index: 1, kind: input, shape index: {}]   ;;  %s3237_s2 = inlined_call_operand.hbm [shape: f32[128,512], index: 2, kind: input, shape index: {}]   ;;  %s3238_s3 = inlined_call_operand.hbm [shape: f32[128,128], index: 3, kind: input, shape index: {}]   ;;  %s3239_s4 = inlined_call_operand.vmem [shape: f32[1,128], index: 4, kind: input, shape index: {}]   ;;  %s3240_s5 = inlined_call_operand.hbm [shape: f32[1,128], index: 5, kind: output, shape index: {}]  }
   0x1   :  { %11 = vsyncpa [#allocation3], 0 }
   0x2   :  { %12 = vsyncpa [#allocation8], 0 }
   0x3   :  { %13 = vsyncpa [#allocation4], 0  ;;  %s2721_s18 = smov [#allocation7]   ;;  %s2722_s20 = smov [#allocation6]  }
   0x4   :  { %s39_s19 = sshll.u32 %s2721_s18, 4  ;;  %s27_s21 = sshll.u32 %s2722_s20, 4  ;;  %s40_s19 = int_to_ptr.vmem [resolvable:$true] %s39_s19  ;;  %s28_s21 = int_to_ptr.vmem [resolvable:$true] %s27_s21 }
   0x5   :  { %s2615_s24 = scalar_lea.hbm %s3237_s2, 8192 }
   0x6   :  { %p2616_p0 = scmp.ne.s32.totalorder %s3237_s2, %s2615_s24  ;;  %p2619_p1 = scmp.lt.u32.totalorder %s2615_s24, %s3237_s2 }
   0x8   :  { %p2621_p2 = pnand %p2619_p1, %p2616_p0 }
   0xa   :  { %2624 = shalt.err (!%p2621_p2)
}
   0xb   :  { %s2625_s29 = scalar_lea.vmem %s40_s19, 8192  ;;  %p2630_p4 = scmp.lt.s32.totalorder %s40_s19, %s40_s19 }
   0xc   :  { %p2626_p3 = scmp.ne.s32.totalorder %s40_s19, %s2625_s29  ;;  %p2631_p5 = scmp.lt.s32.totalorder %s2625_s29, %s2625_s29 }
   0xe   :  { %p2632_p6 = por %p2631_p5, %p2630_p4 }
  0x10   :  { %p2633_p7 = pnand %p2632_p6, %p2626_p3 }
  0x12   :  { %2636 = shalt.err (!%p2633_p7)
}
  0x13   :  { %s2723_s30 = smov 512   ;;  %s2724_s6 = smov 32  }
  0x14   :  { %45 = dma.hbm_to_vmem [thread:$0]  %s3237_s2, 8192, %s40_s19, [#allocation8], %s2723_s30, %s2723_s30, %s2724_s6  }
  0x15   :  { %s2637_s11 = scalar_lea.hbm %s3235_s0, 16 }
  0x16   :  { %p2638_p8 = scmp.ne.s32.totalorder %s3235_s0, %s2637_s11  ;;  %p2641_p9 = scmp.lt.u32.totalorder %s2637_s11, %s3235_s0 }
  0x18   :  { %p2643_p10 = pnand %p2641_p9, %p2638_p8 }
  0x1a   :  { %2646 = shalt.err (!%p2643_p10)
}
  0x1b   :  { %s2725_s16 = smov [#allocation2]   ;;  %s2647_s20 = scalar_lea.hbm %s3236_s1, 4096 }
  0x1c   :  { %21 = dma.hbm_to_smem %s3235_s0, 16, %s2725_s16, [#allocation5]  }
  0x1d   :  { %p2648_p11 = scmp.ne.s32.totalorder %s3236_s1, %s2647_s20  ;;  %p2651_p12 = scmp.lt.u32.totalorder %s2647_s20, %s3236_s1 }
  0x1f   :  { %p2653_p13 = pnand %p2651_p12, %p2648_p11 }
  0x21   :  { %2656 = shalt.err (!%p2653_p13)
}
  0x22   :  { %s2657_s26 = scalar_lea.vmem %s28_s21, 4096  ;;  %p2662_p1 = scmp.lt.s32.totalorder %s28_s21, %s28_s21 }
  0x23   :  { %p2658_p0 = scmp.ne.s32.totalorder %s28_s21, %s2657_s26  ;;  %p2663_p2 = scmp.lt.s32.totalorder %s2657_s26, %s2657_s26 }
  0x25   :  { %p2664_p3 = por %p2663_p2, %p2662_p1 }
  0x27   :  { %p2665_p4 = pnand %p2664_p3, %p2658_p0 }
  0x29   :  { %2668 = shalt.err (!%p2665_p4)
}
  0x2a   :  { %33 = dma.hbm_to_vmem [thread:$0]  %s3236_s1, 4096, %s28_s21, [#allocation3], %s2723_s30, %s2723_s30, %s2724_s6  }
  0x2b   :  { %s2726_s28 = smov [#allocation9]   ;;  %s2669_s9 = scalar_lea.hbm %s3238_s3, 2048 }
  0x2c   :  { %s51_s29 = sshll.u32 %s2726_s28, 4  ;;  %p2670_p5 = scmp.ne.s32.totalorder %s3238_s3, %s2669_s9  ;;  %s52_s29 = int_to_ptr.vmem [resolvable:$true] %s51_s29 }
  0x2d   :  { %p2673_p6 = scmp.lt.u32.totalorder %s2669_s9, %s3238_s3 }
  0x2f   :  { %p2675_p7 = pnand %p2673_p6, %p2670_p5 }
  0x31   :  { %2678 = shalt.err (!%p2675_p7)
}
  0x32   :  { %s2679_s14 = scalar_lea.vmem %s52_s29, 2048  ;;  %p2684_p9 = scmp.lt.s32.totalorder %s52_s29, %s52_s29 }
  0x33   :  { %p2680_p8 = scmp.ne.s32.totalorder %s52_s29, %s2679_s14  ;;  %p2685_p10 = scmp.lt.s32.totalorder %s2679_s14, %s2679_s14 }
  0x35   :  { %p2686_p11 = por %p2685_p10, %p2684_p9 }
  0x37   :  { %p2687_p12 = pnand %p2686_p11, %p2680_p8 }
  0x39   :  { %2690 = shalt.err (!%p2687_p12)
}
  0x3a   :  { %s2727_s1 = smov 128   ;;  %s2728_s21 = smov 8  }
  0x3b   :  { %57 = dma.hbm_to_vmem [thread:$0]  %s3238_s3, 2048, %s52_s29, [#allocation8], %s2727_s1, %s2727_s1, %s2728_s21  }
  0x3c   :  { %2713 = dma.done.wait [#allocation5], 16  }
  0x3d   :  { %2714 = vsyncadd [#allocation5], 4294967280 }
  0x3e   :  { %2715 = dma.done.wait [#allocation3], 4096  }
  0x3f   :  { %2716 = vsyncadd [#allocation3], 4294963200 }
  0x40   :  { %2717 = dma.done.wait [#allocation8], 10240  }
  0x41   :  { %2718 = vsyncadd [#allocation8], 4294957056 }
  0x42   :  { %72 = sfence }
  0x43   :  { %v105_v0 = vld [vmem:[#allocation7 + $0x8] sm:$0xff]  ;;  %v107_v2 = vld [vmem:[#allocation7 + $0x18] sm:$0xff]  ;;  %v104_v5 = vld [vmem:[#allocation7] sm:$0xff]  ;;  %v2729_v7 = vmov 0.0   ;;  %s94_s3 = sld [smem:[#allocation2]]  ;;  %s1947_s19 = sld [smem:[#allocation2 + $0x1]] }
  0x44   :  { %v109_v1 = vld [vmem:[#allocation7 + $0x28] sm:$0xff]  ;;  %v111_v4 = vld [vmem:[#allocation7 + $0x38] sm:$0xff]  ;;  %v108_v6 = vld [vmem:[#allocation7 + $0x20] sm:$0xff]  ;;  %232 = vmatprep.mubr.f32.mxu0 %v2729_v7  ;;  %303 = vmatprep.mubr.f32.mxu1 %v2729_v7  ;;  %s1950_s26 = sld [smem:[#allocation2 + $0x2]]  ;;  %s1953_s8 = sld [smem:[#allocation2 + $0x3]]  ;;  %vm2734_vm0 = vmmov 0  }
  0x45   :  { %v2814_v3 = vpack.c.bf16 %v109_v1, %v105_v0  ;;  %v2818_v8 = vpack.c.bf16 %v111_v4, %v107_v2  ;;  %v2820_v9 = vpack.c.bf16 %v108_v6, %v104_v5  ;;  %v106_v10 = vld [vmem:[#allocation7 + $0x10] sm:$0xff]  ;;  %v113_v12 = vld [vmem:[#allocation7 + $0x48] sm:$0xff]  ;;  %v115_v15 = vld [vmem:[#allocation7 + $0x58] sm:$0xff]  ;;  %s1956_s14 = sld [smem:[#allocation2 + $0x4]]  ;;  %vm1890_vm1 = vcmask 1040384  }
  0x46   :  { %v110_v11 = vld [vmem:[#allocation7 + $0x30] sm:$0xff]  ;;  %v117_v14 = vld [vmem:[#allocation7 + $0x68] sm:$0xff]  ;;  %v119_v16 = vld [vmem:[#allocation7 + $0x78] sm:$0xff] }
  0x47   :  { %2029 = vmatprep.subr.bf16.mxu0 %v2814_v3  ;;  %v2823_v13 = vpack.c.bf16 %v110_v11, %v106_v10  ;;  %2061 = vmatprep.subr.bf16.mxu1 %v2818_v8  ;;  %v2827_v17 = vpack.c.bf16 %v117_v14, %v113_v12  ;;  %v2829_v18 = vpack.c.bf16 %v119_v16, %v115_v15  ;;  %v112_v19 = vld [vmem:[#allocation7 + $0x40] sm:$0xff]  ;;  %v114_v21 = vld [vmem:[#allocation7 + $0x50] sm:$0xff]  ;;  %v121_v24 = vld [vmem:[#allocation7 + $0x88] sm:$0xff] }
  0x48   :  { %2031 = vmatpush1.bf16.msra.mxu0 %v2820_v9  ;;  %v116_v20 = vld [vmem:[#allocation7 + $0x60] sm:$0xff]  ;;  %v118_v23 = vld [vmem:[#allocation7 + $0x70] sm:$0xff]  ;;  %v125_v25 = vld [vmem:[#allocation7 + $0xa8] sm:$0xff] }
  0x49   :  { %2063 = vmatpush1.bf16.msra.mxu1 %v2823_v13  ;;  %v2832_v22 = vpack.c.bf16 %v116_v20, %v112_v19  ;;  %2033 = vmatprep.subr.bf16.mxu0 %v2827_v17  ;;  %v2836_v26 = vpack.c.bf16 %v118_v23, %v114_v21  ;;  %v2838_v27 = vpack.c.bf16 %v125_v25, %v121_v24  ;;  %v123_v28 = vld [vmem:[#allocation7 + $0x98] sm:$0xff]  ;;  %v120_v30 = vld [vmem:[#allocation7 + $0x80] sm:$0xff]  ;;  %v122_v33 = vld [vmem:[#allocation7 + $0x90] sm:$0xff]  ;;  %s95_s15 = sshra.s32 %s94_s3, 3  ;;  %s98_s16 = sand.u32 7, %s94_s3 }
  0x4a   :  { %2065 = vmatprep.subr.bf16.mxu1 %v2829_v18  ;;  %v127_v29 = vld [vmem:[#allocation7 + $0xb8] sm:$0xff]  ;;  %v124_v32 = vld [vmem:[#allocation7 + $0xa0] sm:$0xff]  ;;  %v126_v34 = vld [vmem:[#allocation7 + $0xb0] sm:$0xff]  ;;  %s1968_s17 = sshll.u32 %s95_s15, 5  ;;  %s390_s20 = sshra.s32 %s1947_s19, 3 }
  0x4b   :  { %v2840_v31 = vpack.c.bf16 %v127_v29, %v123_v28  ;;  %v2843_v35 = vpack.c.bf16 %v124_v32, %v120_v30  ;;  %v129_v36 = vld [vmem:[#allocation7 + $0xc8] sm:$0xff]  ;;  %v131_v38 = vld [vmem:[#allocation7 + $0xd8] sm:$0xff]  ;;  %v2847_v39 = vpack.c.bf16 %v126_v34, %v122_v33  ;;  %v128_v42 = vld [vmem:[#allocation7 + $0xc0] sm:$0xff]  ;;  %s101_s18 = sadd.s32 %s1968_s17, %s98_s16  ;;  %s393_s22 = sand.u32 7, %s1947_s19 }
  0x4c   :  { %2035 = vmatpush1.bf16.msra.mxu0 %v2832_v22  ;;  %v133_v37 = vld [vmem:[#allocation7 + $0xe8] sm:$0xff]  ;;  %v135_v41 = vld [vmem:[#allocation7 + $0xf8] sm:$0xff]  ;;  %v132_v43 = vld [vmem:[#allocation7 + $0xe0] sm:$0xff]  ;;  %s102_s2 = scalar_lea.vmem [#allocation6], %s101_s18  ;;  %s1969_s23 = sshll.u32 %s390_s20, 5 }
  0x4d   :  { %2067 = vmatpush1.bf16.msra.mxu1 %v2836_v26  ;;  %2037 = vmatprep.subr.bf16.mxu0 %v2838_v27  ;;  %v2849_v40 = vpack.c.bf16 %v133_v37, %v129_v36  ;;  %v2852_v44 = vpack.c.bf16 %v135_v41, %v131_v38  ;;  %v130_v45 = vld [vmem:[#allocation7 + $0xd0] sm:$0xff]  ;;  %v137_v47 = vld [vmem:[#allocation7 + $0x108] sm:$0xff]  ;;  %v139_v49 = vld [vmem:[#allocation7 + $0x118] sm:$0xff]  ;;  %v2855_v51 = vpack.c.bf16 %v132_v43, %v128_v42  ;;  %s396_s24 = sadd.s32 %s1969_s23, %s393_s22  ;;  %s592_s0 = sshra.s32 %s1950_s26, 3 }
  0x4e   :  { %2069 = vmatprep.subr.bf16.mxu1 %v2840_v31  ;;  %v134_v46 = vld [vmem:[#allocation7 + $0xf0] sm:$0xff]  ;;  %v141_v48 = vld [vmem:[#allocation7 + $0x128] sm:$0xff]  ;;  %v143_v50 = vld [vmem:[#allocation7 + $0x138] sm:$0xff]  ;;  %s397_s25 = scalar_lea.vmem [#allocation6], %s396_s24  ;;  %s595_s27 = sand.u32 7, %s1950_s26 }
  0x4f   :  { %v2859_v52 = vpack.c.bf16 %v134_v46, %v130_v45  ;;  %v2861_v53 = vpack.c.bf16 %v141_v48, %v137_v47  ;;  %v136_v54 = vld [vmem:[#allocation7 + $0x100] sm:$0xff]  ;;  %v138_v56 = vld [vmem:[#allocation7 + $0x110] sm:$0xff]  ;;  %v2864_v57 = vpack.c.bf16 %v143_v50, %v139_v49  ;;  %v145_v59 = vld [vmem:[#allocation7 + $0x148] sm:$0xff]  ;;  %v2730_v48 = vmov 1966171168   ;;  %s1970_s28 = sshll.u32 %s592_s0, 5 }
  0x50   :  { %2039 = vmatpush1.bf16.msra.mxu0 %v2843_v35  ;;  %v140_v55 = vld [vmem:[#allocation7 + $0x120] sm:$0xff]  ;;  %v142_v58 = vld [vmem:[#allocation7 + $0x130] sm:$0xff]  ;;  %v149_v60 = vld [vmem:[#allocation7 + $0x168] sm:$0xff]  ;;  %v317_v49 = vunpack.c.l.s4 %v2730_v48  ;;  %v319_v50 = vlaneseq  ;;  %s598_s29 = sadd.s32 %s1970_s28, %s595_s27  ;;  %s794_s9 = sshra.s32 %s1953_s8, 3 }
  0x51   :  { %2071 = vmatpush1.bf16.msra.mxu1 %v2847_v39  ;;  %2041 = vmatprep.subr.bf16.mxu0 %v2849_v40  ;;  %v147_v61 = vld [vmem:[#allocation7 + $0x158] sm:$0xff]  ;;  %v2867_v63 = vpack.c.bf16 %v140_v55, %v136_v54  ;;  %v2871_v0 = vpack.c.bf16 %v142_v58, %v138_v56  ;;  %v2873_v1 = vpack.c.bf16 %v149_v60, %v145_v59  ;;  %v144_v2 = vld [vmem:[#allocation7 + $0x140] sm:$0xff]  ;;  %v146_v5 = vld [vmem:[#allocation7 + $0x150] sm:$0xff]  ;;  %v2731_v56 = vmov 0.5   ;;  %s599_s7 = scalar_lea.vmem [#allocation6], %s598_s29  ;;  %s797_s10 = sand.u32 7, %s1953_s8 }
  0x52   :  { %2073 = vmatprep.subr.bf16.mxu1 %v2852_v44  ;;  %v151_v62 = vld [vmem:[#allocation7 + $0x178] sm:$0xff]  ;;  %v148_v4 = vld [vmem:[#allocation7 + $0x160] sm:$0xff]  ;;  %v150_v10 = vld [vmem:[#allocation7 + $0x170] sm:$0xff]  ;;  %v318_v54 = vunpack.c.0.s8 %v317_v49  ;;  %v320_v55 = vshrl.u32 %v319_v50, 7  ;;  %v344_v58 = vcombine.low %v2731_v56, %v2731_v56  ;;  %v2732_v59 = vmov 1.0   ;;  %s1971_s11 = sshll.u32 %s794_s9, 5 }
  0x53   :  { %v2876_v6 = vpack.c.bf16 %v151_v62, %v147_v61  ;;  %v153_v11 = vld [vmem:[#allocation7 + $0x188] sm:$0xff]  ;;  %v155_v14 = vld [vmem:[#allocation7 + $0x198] sm:$0xff]  ;;  %v2879_v16 = vpack.c.bf16 %v148_v4, %v144_v2  ;;  %v2883_v19 = vpack.c.bf16 %v150_v10, %v146_v5  ;;  %v152_v21 = vld [vmem:[#allocation7 + $0x180] sm:$0xff]  ;;  %v345_v60 = vcombine.low %v2732_v59, %v2731_v56  ;;  %s800_s12 = sadd.s32 %s1971_s11, %s797_s10  ;;  %s996_s1 = sshra.s32 %s1956_s14, 3 }
  0x54   :  { %2043 = vmatpush1.bf16.msra.mxu0 %v2855_v51  ;;  %v157_v12 = vld [vmem:[#allocation7 + $0x1a8] sm:$0xff]  ;;  %v159_v15 = vld [vmem:[#allocation7 + $0x1b8] sm:$0xff]  ;;  %v156_v23 = vld [vmem:[#allocation7 + $0x1a0] sm:$0xff]  ;;  %v2950_v61 = vsub.s32 %v318_v54, %v320_v55  ;;  %s801_s13 = scalar_lea.vmem [#allocation6], %s800_s12  ;;  %s999_s21 = sand.u32 7, %s1956_s14 }
  0x55   :  { %2075 = vmatpush1.bf16.msra.mxu1 %v2859_v52  ;;  %2045 = vmatprep.subr.bf16.mxu0 %v2861_v53  ;;  %v2885_v20 = vpack.c.bf16 %v157_v12, %v153_v11  ;;  %v154_v24 = vld [vmem:[#allocation7 + $0x190] sm:$0xff]  ;;  %v2888_v25 = vpack.c.bf16 %v159_v15, %v155_v14  ;;  %v161_v29 = vld [vmem:[#allocation7 + $0x1c8] sm:$0xff]  ;;  %v163_v32 = vld [vmem:[#allocation7 + $0x1d8] sm:$0xff]  ;;  %v2891_v34 = vpack.c.bf16 %v156_v23, %v152_v21  ;;  %s1972_s30 = sshll.u32 %s996_s1, 5  ;;  %s1959_s15 = sld [smem:[#allocation2 + $0x5]] }
  0x56   :  { %2077 = vmatprep.subr.bf16.mxu1 %v2864_v57  ;;  %v158_v28 = vld [vmem:[#allocation7 + $0x1b0] sm:$0xff]  ;;  %v165_v30 = vld [vmem:[#allocation7 + $0x1e8] sm:$0xff]  ;;  %v167_v33 = vld [vmem:[#allocation7 + $0x1f8] sm:$0xff]  ;;  %v352_v5 = vrot.slane %v344_v58, %v2950_v61  ;;  %v359_v10 = vrot.slane %v345_v60, %v2950_v61  ;;  %s1002_s6 = sadd.s32 %s1972_s30, %s999_s21  ;;  %s1962_s20 = sld [smem:[#allocation2 + $0x6]] }
  0x57   :  { %v2895_v36 = vpack.c.bf16 %v158_v28, %v154_v24  ;;  %v2897_v37 = vpack.c.bf16 %v165_v30, %v161_v29  ;;  %v160_v38 = vld [vmem:[#allocation7 + $0x1c0] sm:$0xff]  ;;  %v2900_v42 = vpack.c.bf16 %v167_v33, %v163_v32  ;;  %v162_v43 = vld [vmem:[#allocation7 + $0x1d0] sm:$0xff]  ;;  %s1003_s3 = scalar_lea.vmem [#allocation6], %s1002_s6  ;;  %s1965_s0 = sld [smem:[#allocation2 + $0x7]] }
  0x58   :  { %2047 = vmatpush1.bf16.msra.mxu0 %v2867_v63  ;;  %v164_v41 = vld [vmem:[#allocation7 + $0x1e0] sm:$0xff]  ;;  %v166_v45 = vld [vmem:[#allocation7 + $0x1f0] sm:$0xff]  ;;  %v360_v23 = vcombine.low %v352_v5, %v359_v10  ;;  %s2735_s11 = smov [#allocation10]  }
  0x59   :  { %2079 = vmatpush1.bf16.msra.mxu1 %v2871_v0  ;;  %2049 = vmatprep.subr.bf16.mxu0 %v2873_v1  ;;  %v2903_v46 = vpack.c.bf16 %v164_v41, %v160_v38  ;;  %v2907_v47 = vpack.c.bf16 %v166_v45, %v162_v43  ;;  %v103_v28 = vld [vmem:[%s102_s2] ss:$8 sm:$0xf]  ;;  %s1910_s12 = sshll.u32 %s2735_s11, 4  ;;  %s1911_s12 = int_to_ptr.vmem [resolvable:$true] %s1910_s12 }
  0x5a   :  { %2081 = vmatprep.subr.bf16.mxu1 %v2876_v6  ;;  %v2958_v30 = vrot.slane %v360_v23, %v2950_v61  ;;  %p2696_p0 = scmp.lt.s32.totalorder %s1911_s12, %s1911_s12 }
  0x5b   :  { %s1198_s16 = sshra.s32 %s1959_s15, 3  ;;  %s1201_s17 = sand.u32 7, %s1959_s15 }
  0x5c   :  { %2051 = vmatpush1.bf16.msra.mxu0 %v2879_v16  ;;  %s1973_s18 = sshll.u32 %s1198_s16, 5  ;;  %s1400_s22 = sshra.s32 %s1962_s20, 3 }
  0x5d   :  { %2083 = vmatpush1.bf16.msra.mxu1 %v2883_v19  ;;  %2053 = vmatprep.subr.bf16.mxu0 %v2885_v20  ;;  %s1204_s2 = sadd.s32 %s1973_s18, %s1201_s17  ;;  %s1403_s23 = sand.u32 7, %s1962_s20 }
  0x5e   :  { %2085 = vmatprep.subr.bf16.mxu1 %v2888_v25  ;;  %s1205_s19 = scalar_lea.vmem [#allocation6], %s1204_s2  ;;  %s1974_s24 = sshll.u32 %s1400_s22, 5 }
  0x5f   :  { %s1602_s27 = sshra.s32 %s1965_s0, 3  ;;  %s1605_s28 = sand.u32 7, %s1965_s0 }
  0x60   :  { %2055 = vmatpush1.bf16.msra.mxu0 %v2891_v34  ;;  %s1975_s29 = sshll.u32 %s1602_s27, 5 }
  0x61   :  { %2087 = vmatpush1.bf16.msra.mxu1 %v2895_v36  ;;  %2057 = vmatprep.subr.bf16.mxu0 %v2897_v37 }
  0x62   :  { %2089 = vmatprep.subr.bf16.mxu1 %v2900_v42 }
  0x64   :  { %2059 = vmatpush1.bf16.msra.mxu0 %v2903_v46 }
  0x65   :  { %2091 = vmatpush1.bf16.msra.mxu1 %v2907_v47  ;;  %2093 = vmatprep.subr.bf16.mxu0 %v2814_v3 }
  0x66   :  { %2125 = vmatprep.subr.bf16.mxu1 %v2818_v8 }
  0x67   :  { %233 = vmatmul.mubr.f32.vlgmr.msra.gmra.mrb[0].mxu0 %v2729_v7 }
  0x68   :  { %304 = vmatmul.mubr.f32.vlgmr.msra.gmra.mrb[0].mxu1 %v2729_v7  ;;  %2095 = vmatpush1.bf16.msra.mxu0 %v2820_v9 }
  0x69   :  { %2127 = vmatpush1.bf16.msra.mxu1 %v2823_v13  ;;  %2097 = vmatprep.subr.bf16.mxu0 %v2827_v17 }
  0x6a   :  { %2129 = vmatprep.subr.bf16.mxu1 %v2829_v18  ;;  %463 = vmatprep.mubr.f32.mxu0 %v2729_v7 }
  0x6b   :  { %534 = vmatprep.mubr.f32.mxu1 %v2729_v7 }
  0x6c   :  { %2099 = vmatpush1.bf16.msra.mxu0 %v2832_v22 }
  0x6d   :  { %2131 = vmatpush1.bf16.msra.mxu1 %v2836_v26  ;;  %2101 = vmatprep.subr.bf16.mxu0 %v2838_v27 }
  0x6e   :  { %2133 = vmatprep.subr.bf16.mxu1 %v2840_v31 }
  0x70   :  { %2103 = vmatpush1.bf16.msra.mxu0 %v2843_v35 }
  0x71   :  { %2135 = vmatpush1.bf16.msra.mxu1 %v2847_v39  ;;  %2105 = vmatprep.subr.bf16.mxu0 %v2849_v40 }
  0x72   :  { %2137 = vmatprep.subr.bf16.mxu1 %v2852_v44 }
  0x74   :  { %2107 = vmatpush1.bf16.msra.mxu0 %v2855_v51 }
  0x75   :  { %2139 = vmatpush1.bf16.msra.mxu1 %v2859_v52  ;;  %2109 = vmatprep.subr.bf16.mxu0 %v2861_v53 }
  0x76   :  { %2141 = vmatprep.subr.bf16.mxu1 %v2864_v57 }
  0x78   :  { %2111 = vmatpush1.bf16.msra.mxu0 %v2867_v63 }
  0x79   :  { %2143 = vmatpush1.bf16.msra.mxu1 %v2871_v0  ;;  %2113 = vmatprep.subr.bf16.mxu0 %v2873_v1 }
  0x7a   :  { %2145 = vmatprep.subr.bf16.mxu1 %v2876_v6 }
  0x7c   :  { %2115 = vmatpush1.bf16.msra.mxu0 %v2879_v16 }
  0x7d   :  { %2147 = vmatpush1.bf16.msra.mxu1 %v2883_v19  ;;  %2117 = vmatprep.subr.bf16.mxu0 %v2885_v20 }
  0x7e   :  { %2149 = vmatprep.subr.bf16.mxu1 %v2888_v25 }
  0x80   :  { %2119 = vmatpush1.bf16.msra.mxu0 %v2891_v34 }
  0x81   :  { %2151 = vmatpush1.bf16.msra.mxu1 %v2895_v36  ;;  %2121 = vmatprep.subr.bf16.mxu0 %v2897_v37 }
  0x82   :  { %2153 = vmatprep.subr.bf16.mxu1 %v2900_v42 }
  0x84   :  { %2123 = vmatpush1.bf16.msra.mxu0 %v2903_v46 }
  0x85   :  { %2155 = vmatpush1.bf16.msra.mxu1 %v2907_v47  ;;  %2157 = vmatprep.subr.bf16.mxu0 %v2814_v3 }
  0x86   :  { %2189 = vmatprep.subr.bf16.mxu1 %v2818_v8 }
 0x13a   :  { %v234_v62 = vpop.f32.mrb[0].mxu0 }
 0x13b   :  { %v305_v2 = vpop.f32.mrb[0].mxu1  ;;  %v236_v4 = vpop.f32.mrb[1].mxu0 }
 0x13c   :  { %v314_v11 = vcombine.low %v234_v62, %v236_v4  ;;  %v307_v12 = vpop.f32.mrb[1].mxu1 }
 0x13d   :  { %v315_v14 = vcombine.low %v305_v2, %v307_v12 }
 0x13e   :  { %v322_v15 = vrot.slane %v314_v11, %v2950_v61 }
 0x13f   :  { %v329_v21 = vrot.slane %v315_v14, %v2950_v61 }
 0x141   :  { %v330_v24 = vcombine.low %v322_v15, %v329_v21 }
 0x143   :  { %v337_v29 = vrot.slane %v330_v24, %v2950_v61  ;;  %v398_v24 = vld [vmem:[%s397_s25] ss:$8 sm:$0xf]  ;;  %s1406_s25 = sadd.s32 %s1974_s24, %s1403_s23 }
 0x144   :  { %s1407_s26 = scalar_lea.vmem [#allocation6], %s1406_s25 }
 0x145   :  { %v339_v32 = vadd.f32 %v337_v29, %v103_v28 }
 0x147   :  { %v369_v33 = vmul.f32 %v2958_v30, %v339_v32 }
 0x149   :  { %2579 = vtanh.f32 %v369_v33 }
 0x153   :  { %v2580_v38 = vpop.eup %2579 }
 0x154   :  { %v371_v41 = vadd.f32 1.0, %v2580_v38  ;;  %v374_v43 = vrot.slane %v2580_v38, 1  ;;  %v383_v50 = vrot.slane %v2580_v38, 2  ;;  %v378_v58 = vrot.slane %v2580_v38, 3 }
 0x156   :  { %v372_v45 = vmul.f32 0.5, %v371_v41  ;;  %v376_v48 = vadd.f32 1.0, %v374_v43  ;;  %v380_v59 = vadd.f32 1.0, %v378_v58 }
 0x158   :  { %v377_v49 = vmul.f32 0.5, %v376_v48  ;;  %v385_v55 = vmul.f32 %v383_v50, %v372_v45  ;;  %v381_v60 = vmul.f32 0.5, %v380_v59 }
 0x15a   :  { %v382_v54 = vmul.f32 0.0, %v377_v49 }
 0x15c   :  { %v2961_v56 = vadd.f32 %v385_v55, %v382_v54 }
 0x15e   :  { %2581 = vtanh.f32 %v2961_v56 }
 0x168   :  { %v2582_v62 = vpop.eup %2581 }
 0x169   :  { %v388_v2 = vmul.f32 %v2582_v62, %v381_v60 }
 0x16b   :  { %464 = vmatmul.mubr.f32.vlgmr.msra.gmra.mrb[2].mxu0 %v388_v2  ;;  %535 = vmatmul.mubr.f32.vlgmr.msra.gmra.mrb[2].mxu1 %v388_v2 }
 0x16c   :  { %2159 = vmatpush1.bf16.msra.mxu0 %v2820_v9  ;;  %2191 = vmatpush1.bf16.msra.mxu1 %v2823_v13 }
 0x16d   :  { %2161 = vmatprep.subr.bf16.mxu0 %v2827_v17  ;;  %2193 = vmatprep.subr.bf16.mxu1 %v2829_v18 }
 0x16e   :  { %665 = vmatprep.mubr.f32.mxu0 %v2729_v7  ;;  %736 = vmatprep.mubr.f32.mxu1 %v2729_v7 }
 0x170   :  { %2163 = vmatpush1.bf16.msra.mxu0 %v2832_v22  ;;  %2195 = vmatpush1.bf16.msra.mxu1 %v2836_v26 }
 0x171   :  { %2165 = vmatprep.subr.bf16.mxu0 %v2838_v27  ;;  %2197 = vmatprep.subr.bf16.mxu1 %v2840_v31 }
 0x174   :  { %2167 = vmatpush1.bf16.msra.mxu0 %v2843_v35  ;;  %2199 = vmatpush1.bf16.msra.mxu1 %v2847_v39 }
 0x175   :  { %2169 = vmatprep.subr.bf16.mxu0 %v2849_v40  ;;  %2201 = vmatprep.subr.bf16.mxu1 %v2852_v44 }
 0x178   :  { %2171 = vmatpush1.bf16.msra.mxu0 %v2855_v51  ;;  %2203 = vmatpush1.bf16.msra.mxu1 %v2859_v52 }
 0x179   :  { %2173 = vmatprep.subr.bf16.mxu0 %v2861_v53  ;;  %2205 = vmatprep.subr.bf16.mxu1 %v2864_v57 }
 0x17c   :  { %2175 = vmatpush1.bf16.msra.mxu0 %v2867_v63  ;;  %2207 = vmatpush1.bf16.msra.mxu1 %v2871_v0 }
 0x17d   :  { %2177 = vmatprep.subr.bf16.mxu0 %v2873_v1  ;;  %2209 = vmatprep.subr.bf16.mxu1 %v2876_v6 }
 0x180   :  { %2179 = vmatpush1.bf16.msra.mxu0 %v2879_v16  ;;  %2211 = vmatpush1.bf16.msra.mxu1 %v2883_v19 }
 0x181   :  { %2181 = vmatprep.subr.bf16.mxu0 %v2885_v20  ;;  %2213 = vmatprep.subr.bf16.mxu1 %v2888_v25 }
 0x184   :  { %2183 = vmatpush1.bf16.msra.mxu0 %v2891_v34  ;;  %2215 = vmatpush1.bf16.msra.mxu1 %v2895_v36 }
 0x185   :  { %2185 = vmatprep.subr.bf16.mxu0 %v2897_v37  ;;  %2217 = vmatprep.subr.bf16.mxu1 %v2900_v42 }
 0x188   :  { %2187 = vmatpush1.bf16.msra.mxu0 %v2903_v46  ;;  %2219 = vmatpush1.bf16.msra.mxu1 %v2907_v47 }
 0x189   :  { %2221 = vmatprep.subr.bf16.mxu0 %v2814_v3  ;;  %2253 = vmatprep.subr.bf16.mxu1 %v2818_v8 }
 0x23e   :  { %v465_v4 = vpop.f32.mrb[2].mxu0  ;;  %v536_v5 = vpop.f32.mrb[2].mxu1 }
 0x23f   :  { %v467_v10 = vpop.f32.mrb[3].mxu0  ;;  %v538_v11 = vpop.f32.mrb[3].mxu1 }
 0x240   :  { %v545_v12 = vcombine.low %v465_v4, %v467_v10  ;;  %v546_v14 = vcombine.low %v536_v5, %v538_v11 }
 0x242   :  { %v553_v15 = vrot.slane %v545_v12, %v2950_v61  ;;  %v560_v21 = vrot.slane %v546_v14, %v2950_v61 }
 0x244   :  { %v561_v23 = vcombine.low %v553_v15, %v560_v21 }
 0x246   :  { %v568_v28 = vrot.slane %v561_v23, %v2950_v61  ;;  %v600_v23 = vld [vmem:[%s599_s7] ss:$8 sm:$0xf]  ;;  %s1608_s7 = sadd.s32 %s1975_s29, %s1605_s28 }
 0x247   :  { %s1609_s8 = scalar_lea.vmem [#allocation6], %s1608_s7 }
 0x248   :  { %v570_v29 = vadd.f32 %v568_v28, %v398_v24 }
 0x24a   :  { %v571_v32 = vmul.f32 %v570_v29, %v2958_v30 }
 0x24c   :  { %2583 = vtanh.f32 %v571_v32 }
 0x256   :  { %v2584_v33 = vpop.eup %2583 }
 0x257   :  { %v573_v38 = vadd.f32 1.0, %v2584_v33  ;;  %v576_v41 = vrot.slane %v2584_v33, 1  ;;  %v585_v49 = vrot.slane %v2584_v33, 2  ;;  %v580_v58 = vrot.slane %v2584_v33, 3 }
 0x259   :  { %v574_v43 = vmul.f32 0.5, %v573_v38  ;;  %v578_v45 = vadd.f32 1.0, %v576_v41  ;;  %v582_v59 = vadd.f32 1.0, %v580_v58 }
 0x25b   :  { %v579_v48 = vmul.f32 0.5, %v578_v45  ;;  %v587_v54 = vmul.f32 %v585_v49, %v574_v43  ;;  %v583_v60 = vmul.f32 0.5, %v582_v59 }
 0x25d   :  { %v584_v50 = vmul.f32 %v579_v48, %v2961_v56 }
 0x25f   :  { %v3003_v55 = vadd.f32 %v587_v54, %v584_v50 }
 0x261   :  { %2585 = vtanh.f32 %v3003_v55 }
 0x26b   :  { %v2586_v62 = vpop.eup %2585 }
 0x26c   :  { %v590_v2 = vmul.f32 %v2586_v62, %v583_v60 }
 0x26e   :  { %666 = vmatmul.mubr.f32.vlgmr.msra.gmra.mrb[4].mxu0 %v590_v2  ;;  %737 = vmatmul.mubr.f32.vlgmr.msra.gmra.mrb[4].mxu1 %v590_v2 }
 0x26f   :  { %2223 = vmatpush1.bf16.msra.mxu0 %v2820_v9  ;;  %2255 = vmatpush1.bf16.msra.mxu1 %v2823_v13 }
 0x270   :  { %2225 = vmatprep.subr.bf16.mxu0 %v2827_v17  ;;  %2257 = vmatprep.subr.bf16.mxu1 %v2829_v18 }
 0x271   :  { %867 = vmatprep.mubr.f32.mxu0 %v2729_v7  ;;  %938 = vmatprep.mubr.f32.mxu1 %v2729_v7 }
 0x273   :  { %2227 = vmatpush1.bf16.msra.mxu0 %v2832_v22  ;;  %2259 = vmatpush1.bf16.msra.mxu1 %v2836_v26 }
 0x274   :  { %2229 = vmatprep.subr.bf16.mxu0 %v2838_v27  ;;  %2261 = vmatprep.subr.bf16.mxu1 %v2840_v31 }
 0x277   :  { %2231 = vmatpush1.bf16.msra.mxu0 %v2843_v35  ;;  %2263 = vmatpush1.bf16.msra.mxu1 %v2847_v39 }
 0x278   :  { %2233 = vmatprep.subr.bf16.mxu0 %v2849_v40  ;;  %2265 = vmatprep.subr.bf16.mxu1 %v2852_v44 }
 0x27b   :  { %2235 = vmatpush1.bf16.msra.mxu0 %v2855_v51  ;;  %2267 = vmatpush1.bf16.msra.mxu1 %v2859_v52 }
 0x27c   :  { %2237 = vmatprep.subr.bf16.mxu0 %v2861_v53  ;;  %2269 = vmatprep.subr.bf16.mxu1 %v2864_v57 }
 0x27f   :  { %2239 = vmatpush1.bf16.msra.mxu0 %v2867_v63  ;;  %2271 = vmatpush1.bf16.msra.mxu1 %v2871_v0 }
 0x280   :  { %2241 = vmatprep.subr.bf16.mxu0 %v2873_v1  ;;  %2273 = vmatprep.subr.bf16.mxu1 %v2876_v6 }
 0x283   :  { %2243 = vmatpush1.bf16.msra.mxu0 %v2879_v16  ;;  %2275 = vmatpush1.bf16.msra.mxu1 %v2883_v19 }
 0x284   :  { %2245 = vmatprep.subr.bf16.mxu0 %v2885_v20  ;;  %2277 = vmatprep.subr.bf16.mxu1 %v2888_v25 }
 0x287   :  { %2247 = vmatpush1.bf16.msra.mxu0 %v2891_v34  ;;  %2279 = vmatpush1.bf16.msra.mxu1 %v2895_v36 }
 0x288   :  { %2249 = vmatprep.subr.bf16.mxu0 %v2897_v37  ;;  %2281 = vmatprep.subr.bf16.mxu1 %v2900_v42 }
 0x28b   :  { %2251 = vmatpush1.bf16.msra.mxu0 %v2903_v46  ;;  %2283 = vmatpush1.bf16.msra.mxu1 %v2907_v47 }
 0x28c   :  { %2285 = vmatprep.subr.bf16.mxu0 %v2814_v3  ;;  %2317 = vmatprep.subr.bf16.mxu1 %v2818_v8 }
 0x341   :  { %v667_v56 = vpop.f32.mrb[4].mxu0  ;;  %v738_v4 = vpop.f32.mrb[4].mxu1 }
 0x342   :  { %v669_v5 = vpop.f32.mrb[5].mxu0  ;;  %v740_v10 = vpop.f32.mrb[5].mxu1 }
 0x343   :  { %v747_v11 = vcombine.low %v667_v56, %v669_v5  ;;  %v748_v12 = vcombine.low %v738_v4, %v740_v10 }
 0x345   :  { %v755_v14 = vrot.slane %v747_v11, %v2950_v61  ;;  %v762_v15 = vrot.slane %v748_v12, %v2950_v61 }
 0x347   :  { %v763_v21 = vcombine.low %v755_v14, %v762_v15 }
 0x349   :  { %v770_v24 = vrot.slane %v763_v21, %v2950_v61  ;;  %v802_v21 = vld [vmem:[%s801_s13] ss:$8 sm:$0xf]  ;;  %s2695_s13 = scalar_lea.vmem %s1911_s12, 32 }
 0x34b   :  { %v772_v28 = vadd.f32 %v770_v24, %v600_v23 }
 0x34d   :  { %v773_v29 = vmul.f32 %v772_v28, %v2958_v30 }
 0x34f   :  { %2587 = vtanh.f32 %v773_v29 }
 0x359   :  { %v2588_v32 = vpop.eup %2587 }
 0x35a   :  { %v775_v33 = vadd.f32 1.0, %v2588_v32  ;;  %v778_v38 = vrot.slane %v2588_v32, 1  ;;  %v787_v48 = vrot.slane %v2588_v32, 2  ;;  %v782_v58 = vrot.slane %v2588_v32, 3 }
 0x35c   :  { %v776_v41 = vmul.f32 0.5, %v775_v33  ;;  %v780_v43 = vadd.f32 1.0, %v778_v38  ;;  %v784_v59 = vadd.f32 1.0, %v782_v58 }
 0x35e   :  { %v781_v45 = vmul.f32 0.5, %v780_v43  ;;  %v789_v50 = vmul.f32 %v787_v48, %v776_v41  ;;  %v785_v60 = vmul.f32 0.5, %v784_v59 }
 0x360   :  { %v786_v49 = vmul.f32 %v781_v45, %v3003_v55 }
 0x362   :  { %v3045_v54 = vadd.f32 %v789_v50, %v786_v49 }
 0x364   :  { %2589 = vtanh.f32 %v3045_v54 }
 0x36e   :  { %v2590_v62 = vpop.eup %2589 }
 0x36f   :  { %v792_v2 = vmul.f32 %v2590_v62, %v785_v60 }
 0x371   :  { %868 = vmatmul.mubr.f32.vlgmr.msra.gmra.mrb[6].mxu0 %v792_v2  ;;  %939 = vmatmul.mubr.f32.vlgmr.msra.gmra.mrb[6].mxu1 %v792_v2 }
 0x372   :  { %2287 = vmatpush1.bf16.msra.mxu0 %v2820_v9  ;;  %2319 = vmatpush1.bf16.msra.mxu1 %v2823_v13 }
 0x373   :  { %2289 = vmatprep.subr.bf16.mxu0 %v2827_v17  ;;  %2321 = vmatprep.subr.bf16.mxu1 %v2829_v18 }
 0x374   :  { %1069 = vmatprep.mubr.f32.mxu0 %v2729_v7  ;;  %1140 = vmatprep.mubr.f32.mxu1 %v2729_v7 }
 0x376   :  { %2291 = vmatpush1.bf16.msra.mxu0 %v2832_v22  ;;  %2323 = vmatpush1.bf16.msra.mxu1 %v2836_v26 }
 0x377   :  { %2293 = vmatprep.subr.bf16.mxu0 %v2838_v27  ;;  %2325 = vmatprep.subr.bf16.mxu1 %v2840_v31 }
 0x37a   :  { %2295 = vmatpush1.bf16.msra.mxu0 %v2843_v35  ;;  %2327 = vmatpush1.bf16.msra.mxu1 %v2847_v39 }
 0x37b   :  { %2297 = vmatprep.subr.bf16.mxu0 %v2849_v40  ;;  %2329 = vmatprep.subr.bf16.mxu1 %v2852_v44 }
 0x37e   :  { %2299 = vmatpush1.bf16.msra.mxu0 %v2855_v51  ;;  %2331 = vmatpush1.bf16.msra.mxu1 %v2859_v52 }
 0x37f   :  { %2301 = vmatprep.subr.bf16.mxu0 %v2861_v53  ;;  %2333 = vmatprep.subr.bf16.mxu1 %v2864_v57 }
 0x382   :  { %2303 = vmatpush1.bf16.msra.mxu0 %v2867_v63  ;;  %2335 = vmatpush1.bf16.msra.mxu1 %v2871_v0 }
 0x383   :  { %2305 = vmatprep.subr.bf16.mxu0 %v2873_v1  ;;  %2337 = vmatprep.subr.bf16.mxu1 %v2876_v6 }
 0x386   :  { %2307 = vmatpush1.bf16.msra.mxu0 %v2879_v16  ;;  %2339 = vmatpush1.bf16.msra.mxu1 %v2883_v19 }
 0x387   :  { %2309 = vmatprep.subr.bf16.mxu0 %v2885_v20  ;;  %2341 = vmatprep.subr.bf16.mxu1 %v2888_v25 }
 0x38a   :  { %2311 = vmatpush1.bf16.msra.mxu0 %v2891_v34  ;;  %2343 = vmatpush1.bf16.msra.mxu1 %v2895_v36 }
 0x38b   :  { %2313 = vmatprep.subr.bf16.mxu0 %v2897_v37  ;;  %2345 = vmatprep.subr.bf16.mxu1 %v2900_v42 }
 0x38e   :  { %2315 = vmatpush1.bf16.msra.mxu0 %v2903_v46  ;;  %2347 = vmatpush1.bf16.msra.mxu1 %v2907_v47 }
 0x38f   :  { %2349 = vmatprep.subr.bf16.mxu0 %v2814_v3  ;;  %2381 = vmatprep.subr.bf16.mxu1 %v2818_v8 }
 0x444   :  { %v869_v55 = vpop.f32.mrb[6].mxu0  ;;  %v940_v56 = vpop.f32.mrb[6].mxu1 }
 0x445   :  { %v871_v4 = vpop.f32.mrb[7].mxu0  ;;  %v942_v5 = vpop.f32.mrb[7].mxu1 }
 0x446   :  { %v949_v10 = vcombine.low %v869_v55, %v871_v4  ;;  %v950_v11 = vcombine.low %v940_v56, %v942_v5 }
 0x448   :  { %v957_v12 = vrot.slane %v949_v10, %v2950_v61  ;;  %v964_v14 = vrot.slane %v950_v11, %v2950_v61 }
 0x44a   :  { %v965_v15 = vcombine.low %v957_v12, %v964_v14 }
 0x44c   :  { %v972_v23 = vrot.slane %v965_v15, %v2950_v61  ;;  %v1004_v15 = vld [vmem:[%s1003_s3] ss:$8 sm:$0xf] }
 0x44e   :  { %v974_v24 = vadd.f32 %v972_v23, %v802_v21 }
 0x450   :  { %v975_v28 = vmul.f32 %v974_v24, %v2958_v30 }
 0x452   :  { %2591 = vtanh.f32 %v975_v28 }
 0x45c   :  { %v2592_v29 = vpop.eup %2591 }
 0x45d   :  { %v977_v32 = vadd.f32 1.0, %v2592_v29  ;;  %v980_v33 = vrot.slane %v2592_v29, 1  ;;  %v989_v45 = vrot.slane %v2592_v29, 2  ;;  %v984_v58 = vrot.slane %v2592_v29, 3 }
 0x45f   :  { %v978_v38 = vmul.f32 0.5, %v977_v32  ;;  %v982_v41 = vadd.f32 1.0, %v980_v33  ;;  %v986_v59 = vadd.f32 1.0, %v984_v58 }
 0x461   :  { %v983_v43 = vmul.f32 0.5, %v982_v41  ;;  %v991_v49 = vmul.f32 %v989_v45, %v978_v38  ;;  %v987_v60 = vmul.f32 0.5, %v986_v59 }
 0x463   :  { %v988_v48 = vmul.f32 %v983_v43, %v3045_v54 }
 0x465   :  { %v3087_v50 = vadd.f32 %v991_v49, %v988_v48 }
 0x467   :  { %2593 = vtanh.f32 %v3087_v50 }
 0x471   :  { %v2594_v62 = vpop.eup %2593 }
 0x472   :  { %v994_v2 = vmul.f32 %v2594_v62, %v987_v60 }
 0x474   :  { %1070 = vmatmul.mubr.f32.vlgmr.msra.gmra.mrb[8].mxu0 %v994_v2  ;;  %1141 = vmatmul.mubr.f32.vlgmr.msra.gmra.mrb[8].mxu1 %v994_v2 }
 0x475   :  { %2351 = vmatpush1.bf16.msra.mxu0 %v2820_v9  ;;  %2383 = vmatpush1.bf16.msra.mxu1 %v2823_v13 }
 0x476   :  { %2353 = vmatprep.subr.bf16.mxu0 %v2827_v17  ;;  %2385 = vmatprep.subr.bf16.mxu1 %v2829_v18 }
 0x477   :  { %1271 = vmatprep.mubr.f32.mxu0 %v2729_v7  ;;  %1342 = vmatprep.mubr.f32.mxu1 %v2729_v7 }
 0x479   :  { %2355 = vmatpush1.bf16.msra.mxu0 %v2832_v22  ;;  %2387 = vmatpush1.bf16.msra.mxu1 %v2836_v26 }
 0x47a   :  { %2357 = vmatprep.subr.bf16.mxu0 %v2838_v27  ;;  %2389 = vmatprep.subr.bf16.mxu1 %v2840_v31 }
 0x47d   :  { %2359 = vmatpush1.bf16.msra.mxu0 %v2843_v35  ;;  %2391 = vmatpush1.bf16.msra.mxu1 %v2847_v39 }
 0x47e   :  { %2361 = vmatprep.subr.bf16.mxu0 %v2849_v40  ;;  %2393 = vmatprep.subr.bf16.mxu1 %v2852_v44 }
 0x481   :  { %2363 = vmatpush1.bf16.msra.mxu0 %v2855_v51  ;;  %2395 = vmatpush1.bf16.msra.mxu1 %v2859_v52 }
 0x482   :  { %2365 = vmatprep.subr.bf16.mxu0 %v2861_v53  ;;  %2397 = vmatprep.subr.bf16.mxu1 %v2864_v57 }
 0x485   :  { %2367 = vmatpush1.bf16.msra.mxu0 %v2867_v63  ;;  %2399 = vmatpush1.bf16.msra.mxu1 %v2871_v0 }
 0x486   :  { %2369 = vmatprep.subr.bf16.mxu0 %v2873_v1  ;;  %2401 = vmatprep.subr.bf16.mxu1 %v2876_v6 }
 0x489   :  { %2371 = vmatpush1.bf16.msra.mxu0 %v2879_v16  ;;  %2403 = vmatpush1.bf16.msra.mxu1 %v2883_v19 }
 0x48a   :  { %2373 = vmatprep.subr.bf16.mxu0 %v2885_v20  ;;  %2405 = vmatprep.subr.bf16.mxu1 %v2888_v25 }
 0x48d   :  { %2375 = vmatpush1.bf16.msra.mxu0 %v2891_v34  ;;  %2407 = vmatpush1.bf16.msra.mxu1 %v2895_v36 }
 0x48e   :  { %2377 = vmatprep.subr.bf16.mxu0 %v2897_v37  ;;  %2409 = vmatprep.subr.bf16.mxu1 %v2900_v42 }
 0x491   :  { %2379 = vmatpush1.bf16.msra.mxu0 %v2903_v46  ;;  %2411 = vmatpush1.bf16.msra.mxu1 %v2907_v47 }
 0x492   :  { %2413 = vmatprep.subr.bf16.mxu0 %v2814_v3  ;;  %2445 = vmatprep.subr.bf16.mxu1 %v2818_v8 }
 0x547   :  { %v1071_v54 = vpop.f32.mrb[8].mxu0  ;;  %v1142_v55 = vpop.f32.mrb[8].mxu1 }
 0x548   :  { %v1073_v56 = vpop.f32.mrb[9].mxu0  ;;  %v1144_v4 = vpop.f32.mrb[9].mxu1 }
 0x549   :  { %v1151_v5 = vcombine.low %v1071_v54, %v1073_v56  ;;  %v1152_v10 = vcombine.low %v1142_v55, %v1144_v4 }
 0x54b   :  { %v1159_v11 = vrot.slane %v1151_v5, %v2950_v61  ;;  %v1166_v12 = vrot.slane %v1152_v10, %v2950_v61 }
 0x54d   :  { %v1167_v14 = vcombine.low %v1159_v11, %v1166_v12 }
 0x54f   :  { %v1174_v21 = vrot.slane %v1167_v14, %v2950_v61 }
 0x551   :  { %v1176_v23 = vadd.f32 %v1174_v21, %v1004_v15 }
 0x553   :  { %v1177_v24 = vmul.f32 %v1176_v23, %v2958_v30 }
 0x555   :  { %2595 = vtanh.f32 %v1177_v24 }
 0x55f   :  { %v2596_v28 = vpop.eup %2595 }
 0x560   :  { %v1179_v29 = vadd.f32 1.0, %v2596_v28  ;;  %v1182_v32 = vrot.slane %v2596_v28, 1  ;;  %v1191_v43 = vrot.slane %v2596_v28, 2  ;;  %v1186_v58 = vrot.slane %v2596_v28, 3 }
 0x562   :  { %v1180_v33 = vmul.f32 0.5, %v1179_v29  ;;  %v1184_v38 = vadd.f32 1.0, %v1182_v32  ;;  %v1188_v59 = vadd.f32 1.0, %v1186_v58 }
 0x564   :  { %v1185_v41 = vmul.f32 0.5, %v1184_v38  ;;  %v1193_v48 = vmul.f32 %v1191_v43, %v1180_v33  ;;  %v1189_v60 = vmul.f32 0.5, %v1188_v59 }
 0x566   :  { %v1190_v45 = vmul.f32 %v1185_v41, %v3087_v50 }
 0x568   :  { %v3129_v49 = vadd.f32 %v1193_v48, %v1190_v45 }
 0x56a   :  { %2597 = vtanh.f32 %v3129_v49 }
 0x574   :  { %v2598_v62 = vpop.eup %2597 }
 0x575   :  { %v1196_v2 = vmul.f32 %v2598_v62, %v1189_v60  ;;  %v2733_v62 = vmov 0.0|0.0  }
 0x577   :  { %1272 = vmatmul.mubr.f32.vlgmr.msra.gmra.mrb[10].mxu0 %v1196_v2  ;;  %1343 = vmatmul.mubr.f32.vlgmr.msra.gmra.mrb[10].mxu1 %v1196_v2 }
 0x578   :  { %2415 = vmatpush1.bf16.msra.mxu0 %v2820_v9  ;;  %2447 = vmatpush1.bf16.msra.mxu1 %v2823_v13 }
 0x579   :  { %2417 = vmatprep.subr.bf16.mxu0 %v2827_v17  ;;  %2449 = vmatprep.subr.bf16.mxu1 %v2829_v18 }
 0x57a   :  { %1473 = vmatprep.mubr.f32.mxu0 %v2729_v7  ;;  %1544 = vmatprep.mubr.f32.mxu1 %v2729_v7 }
 0x57c   :  { %2419 = vmatpush1.bf16.msra.mxu0 %v2832_v22  ;;  %2451 = vmatpush1.bf16.msra.mxu1 %v2836_v26 }
 0x57d   :  { %2421 = vmatprep.subr.bf16.mxu0 %v2838_v27  ;;  %2453 = vmatprep.subr.bf16.mxu1 %v2840_v31 }
 0x580   :  { %2423 = vmatpush1.bf16.msra.mxu0 %v2843_v35  ;;  %2455 = vmatpush1.bf16.msra.mxu1 %v2847_v39 }
 0x581   :  { %2425 = vmatprep.subr.bf16.mxu0 %v2849_v40  ;;  %2457 = vmatprep.subr.bf16.mxu1 %v2852_v44 }
 0x584   :  { %2427 = vmatpush1.bf16.msra.mxu0 %v2855_v51  ;;  %2459 = vmatpush1.bf16.msra.mxu1 %v2859_v52 }
 0x585   :  { %2429 = vmatprep.subr.bf16.mxu0 %v2861_v53  ;;  %2461 = vmatprep.subr.bf16.mxu1 %v2864_v57 }
 0x588   :  { %2431 = vmatpush1.bf16.msra.mxu0 %v2867_v63  ;;  %2463 = vmatpush1.bf16.msra.mxu1 %v2871_v0 }
 0x589   :  { %2433 = vmatprep.subr.bf16.mxu0 %v2873_v1  ;;  %2465 = vmatprep.subr.bf16.mxu1 %v2876_v6 }
 0x58c   :  { %2435 = vmatpush1.bf16.msra.mxu0 %v2879_v16  ;;  %2467 = vmatpush1.bf16.msra.mxu1 %v2883_v19 }
 0x58d   :  { %2437 = vmatprep.subr.bf16.mxu0 %v2885_v20  ;;  %2469 = vmatprep.subr.bf16.mxu1 %v2888_v25 }
 0x590   :  { %2439 = vmatpush1.bf16.msra.mxu0 %v2891_v34  ;;  %2471 = vmatpush1.bf16.msra.mxu1 %v2895_v36 }
 0x591   :  { %2441 = vmatprep.subr.bf16.mxu0 %v2897_v37  ;;  %2473 = vmatprep.subr.bf16.mxu1 %v2900_v42 }
 0x594   :  { %2443 = vmatpush1.bf16.msra.mxu0 %v2903_v46  ;;  %2475 = vmatpush1.bf16.msra.mxu1 %v2907_v47 }
 0x595   :  { %2477 = vmatprep.subr.bf16.mxu0 %v2814_v3  ;;  %2509 = vmatprep.subr.bf16.mxu1 %v2818_v8  ;;  %v1206_v3 = vld [vmem:[%s1205_s19] ss:$8 sm:$0xf] }
 0x64a   :  { %v1273_v50 = vpop.f32.mrb[10].mxu0  ;;  %v1344_v54 = vpop.f32.mrb[10].mxu1 }
 0x64b   :  { %v1275_v55 = vpop.f32.mrb[11].mxu0  ;;  %v1346_v56 = vpop.f32.mrb[11].mxu1 }
 0x64c   :  { %v1353_v4 = vcombine.low %v1273_v50, %v1275_v55  ;;  %v1354_v5 = vcombine.low %v1344_v54, %v1346_v56  ;;  %v1806_v50 = vld [vmem:[#allocation9 + $0x18] sm:$0xff]  ;;  %v1807_v55 = vld [vmem:[#allocation9 + $0x20] sm:$0xff]  ;;  %v1808_v56 = vld [vmem:[#allocation9 + $0x28] sm:$0xff] }
 0x64e   :  { %v1361_v10 = vrot.slane %v1353_v4, %v2950_v61  ;;  %v1368_v11 = vrot.slane %v1354_v5, %v2950_v61  ;;  %v2547_v4 = vpack.c.bf16 %v1808_v56, %v1807_v55  ;;  %v1809_v5 = vld [vmem:[#allocation9 + $0x30] sm:$0xff] }
 0x650   :  { %v1369_v12 = vcombine.low %v1361_v10, %v1368_v11  ;;  %v1810_v10 = vld [vmem:[#allocation9 + $0x38] sm:$0xff] }
 0x651   :  { %v2550_v11 = vpack.c.bf16 %v1810_v10, %v1809_v5 }
 0x652   :  { %v1376_v8 = vrot.slane %v1369_v12, %v2950_v61  ;;  %v1811_v12 = vld [vmem:[#allocation9 + $0x40] sm:$0xff] }
 0x654   :  { %v1378_v14 = vadd.f32 %v1376_v8, %v1206_v3  ;;  %v1812_v3 = vld [vmem:[#allocation9 + $0x48] sm:$0xff] }
 0x655   :  { %v2553_v8 = vpack.c.bf16 %v1812_v3, %v1811_v12 }
 0x656   :  { %v1379_v15 = vmul.f32 %v1378_v14, %v2958_v30  ;;  %v1813_v14 = vld [vmem:[#allocation9 + $0x50] sm:$0xff] }
 0x658   :  { %2599 = vtanh.f32 %v1379_v15 }
 0x662   :  { %v2600_v21 = vpop.eup %2599 }
 0x663   :  { %v1381_v23 = vadd.f32 1.0, %v2600_v21  ;;  %v1384_v24 = vrot.slane %v2600_v21, 1  ;;  %v1393_v33 = vrot.slane %v2600_v21, 2  ;;  %v1388_v45 = vrot.slane %v2600_v21, 3  ;;  %v1815_v21 = vld [vmem:[#allocation9 + $0x60] sm:$0xff] }
 0x665   :  { %v1382_v28 = vmul.f32 0.5, %v1381_v23  ;;  %v1386_v29 = vadd.f32 1.0, %v1384_v24  ;;  %v1390_v48 = vadd.f32 1.0, %v1388_v45  ;;  %v1816_v23 = vld [vmem:[#allocation9 + $0x68] sm:$0xff] }
 0x666   :  { %v2559_v24 = vpack.c.bf16 %v1816_v23, %v1815_v21 }
 0x667   :  { %v1387_v32 = vmul.f32 0.5, %v1386_v29  ;;  %v1395_v41 = vmul.f32 %v1393_v33, %v1382_v28  ;;  %v1391_v58 = vmul.f32 0.5, %v1390_v48  ;;  %v1817_v28 = vld [vmem:[#allocation9 + $0x70] sm:$0xff]  ;;  %v1818_v29 = vld [vmem:[#allocation9 + $0x78] sm:$0xff] }
 0x669   :  { %v1392_v38 = vmul.f32 %v1387_v32, %v3129_v49  ;;  %v1805_v49 = vld [vmem:[#allocation9 + $0x10] sm:$0xff]  ;;  %v2562_v32 = vpack.c.bf16 %v1818_v29, %v1817_v28 }
 0x66a   :  { %v2544_v54 = vpack.c.bf16 %v1806_v50, %v1805_v49 }
 0x66b   :  { %v3171_v43 = vadd.f32 %v1395_v41, %v1392_v38 }
 0x66d   :  { %2601 = vtanh.f32 %v3171_v43 }
 0x677   :  { %v2602_v59 = vpop.eup %2601 }
 0x678   :  { %v1398_v60 = vmul.f32 %v2602_v59, %v1391_v58 }
 0x67a   :  { %1474 = vmatmul.mubr.f32.vlgmr.msra.gmra.mrb[12].mxu0 %v1398_v60  ;;  %1545 = vmatmul.mubr.f32.vlgmr.msra.gmra.mrb[12].mxu1 %v1398_v60 }
 0x67b   :  { %2479 = vmatpush1.bf16.msra.mxu0 %v2820_v9  ;;  %2511 = vmatpush1.bf16.msra.mxu1 %v2823_v13 }
 0x67c   :  { %2481 = vmatprep.subr.bf16.mxu0 %v2827_v17  ;;  %2513 = vmatprep.subr.bf16.mxu1 %v2829_v18 }
 0x67d   :  { %1675 = vmatprep.mubr.f32.mxu0 %v2729_v7  ;;  %1746 = vmatprep.mubr.f32.mxu1 %v2729_v7 }
 0x67f   :  { %2483 = vmatpush1.bf16.msra.mxu0 %v2832_v22  ;;  %2515 = vmatpush1.bf16.msra.mxu1 %v2836_v26 }
 0x680   :  { %2485 = vmatprep.subr.bf16.mxu0 %v2838_v27  ;;  %2517 = vmatprep.subr.bf16.mxu1 %v2840_v31 }
 0x683   :  { %2487 = vmatpush1.bf16.msra.mxu0 %v2843_v35  ;;  %2519 = vmatpush1.bf16.msra.mxu1 %v2847_v39  ;;  %v1408_v39 = vld [vmem:[%s1407_s26] ss:$8 sm:$0xf] }
 0x684   :  { %2489 = vmatprep.subr.bf16.mxu0 %v2849_v40  ;;  %2521 = vmatprep.subr.bf16.mxu1 %v2852_v44 }
 0x687   :  { %2491 = vmatpush1.bf16.msra.mxu0 %v2855_v51  ;;  %2523 = vmatpush1.bf16.msra.mxu1 %v2859_v52 }
 0x688   :  { %2493 = vmatprep.subr.bf16.mxu0 %v2861_v53  ;;  %2525 = vmatprep.subr.bf16.mxu1 %v2864_v57 }
 0x68b   :  { %2495 = vmatpush1.bf16.msra.mxu0 %v2867_v63  ;;  %2527 = vmatpush1.bf16.msra.mxu1 %v2871_v0 }
 0x68c   :  { %2497 = vmatprep.subr.bf16.mxu0 %v2873_v1  ;;  %2529 = vmatprep.subr.bf16.mxu1 %v2876_v6 }
 0x68f   :  { %2499 = vmatpush1.bf16.msra.mxu0 %v2879_v16  ;;  %2531 = vmatpush1.bf16.msra.mxu1 %v2883_v19 }
 0x690   :  { %2501 = vmatprep.subr.bf16.mxu0 %v2885_v20  ;;  %2533 = vmatprep.subr.bf16.mxu1 %v2888_v25 }
 0x693   :  { %2503 = vmatpush1.bf16.msra.mxu0 %v2891_v34  ;;  %2535 = vmatpush1.bf16.msra.mxu1 %v2895_v36 }
 0x694   :  { %2505 = vmatprep.subr.bf16.mxu0 %v2897_v37  ;;  %2537 = vmatprep.subr.bf16.mxu1 %v2900_v42 }
 0x697   :  { %2507 = vmatpush1.bf16.msra.mxu0 %v2903_v46  ;;  %2539 = vmatpush1.bf16.msra.mxu1 %v2907_v47  ;;  %v1803_v46 = vld [vmem:[#allocation9] sm:$0xff]  ;;  %v1804_v47 = vld [vmem:[#allocation9 + $0x8] sm:$0xff] }
 0x698   :  { %2540 = vmatprep.subr.bf16.mxu0 %v2733_v62  ;;  %v2541_v2 = vpack.c.bf16 %v1804_v47, %v1803_v46 }
 0x74d   :  { %v1475_v9 = vpop.f32.mrb[12].mxu0  ;;  %v1546_v13 = vpop.f32.mrb[12].mxu1 }
 0x74e   :  { %v1477_v17 = vpop.f32.mrb[13].mxu0  ;;  %v1548_v18 = vpop.f32.mrb[13].mxu1 }
 0x74f   :  { %v1555_v22 = vcombine.low %v1475_v9, %v1477_v17  ;;  %v1556_v26 = vcombine.low %v1546_v13, %v1548_v18  ;;  %v1610_v9 = vld [vmem:[%s1609_s8] ss:$8 sm:$0xf] }
 0x751   :  { %v1563_v27 = vrot.slane %v1555_v22, %v2950_v61  ;;  %v1570_v31 = vrot.slane %v1556_v26, %v2950_v61 }
 0x753   :  { %v1571_v35 = vcombine.low %v1563_v27, %v1570_v31 }
 0x755   :  { %v1578_v40 = vrot.slane %v1571_v35, %v2950_v61 }
 0x757   :  { %v1580_v44 = vadd.f32 %v1578_v40, %v1408_v39 }
 0x759   :  { %v1581_v51 = vmul.f32 %v1580_v44, %v2958_v30 }
 0x75b   :  { %2603 = vtanh.f32 %v1581_v51 }
 0x765   :  { %v2604_v52 = vpop.eup %2603 }
 0x766   :  { %v1583_v53 = vadd.f32 1.0, %v2604_v52  ;;  %v1586_v57 = vrot.slane %v2604_v52, 1  ;;  %v1595_v6 = vrot.slane %v2604_v52, 2  ;;  %v1590_v25 = vrot.slane %v2604_v52, 3 }
 0x768   :  { %v1584_v63 = vmul.f32 0.5, %v1583_v53  ;;  %v1588_v0 = vadd.f32 1.0, %v1586_v57  ;;  %v1592_v34 = vadd.f32 1.0, %v1590_v25 }
 0x76a   :  { %v1589_v1 = vmul.f32 0.5, %v1588_v0  ;;  %v1597_v19 = vmul.f32 %v1595_v6, %v1584_v63  ;;  %v1593_v36 = vmul.f32 0.5, %v1592_v34 }
 0x76c   :  { %v1594_v16 = vmul.f32 %v1589_v1, %v3171_v43 }
 0x76e   :  { %v3211_v20 = vadd.f32 %v1597_v19, %v1594_v16 }
 0x770   :  { %2605 = vtanh.f32 %v3211_v20 }
 0x77a   :  { %v2606_v37 = vpop.eup %2605 }
 0x77b   :  { %v1600_v42 = vmul.f32 %v2606_v37, %v1593_v36 }
 0x77d   :  { %1676 = vmatmul.mubr.f32.vlgmr.msra.gmra.mrb[14].mxu0 %v1600_v42  ;;  %1747 = vmatmul.mubr.f32.vlgmr.msra.gmra.mrb[14].mxu1 %v1600_v42 }
 0x77e   :  { %2025 = vmatprep.mubr.msk.f32.mxu0 %vm2734_vm0, %v2729_v7  ;;  %2542 = vmatpush3.bf16.msra.mxu0 %v2541_v2  ;;  %v1814_v7 = vld [vmem:[#allocation9 + $0x58] sm:$0xff] }
 0x77f   :  { %2543 = vmatprep.subr.bf16.mxu0 %v2733_v62  ;;  %v2556_v15 = vpack.c.bf16 %v1814_v7, %v1813_v14 }
 0x782   :  { %2545 = vmatpush3.bf16.msra.mxu0 %v2544_v54 }
 0x783   :  { %2546 = vmatprep.subr.bf16.mxu0 %v2733_v62 }
 0x786   :  { %2548 = vmatpush3.bf16.msra.mxu0 %v2547_v4 }
 0x787   :  { %2549 = vmatprep.subr.bf16.mxu0 %v2733_v62 }
 0x78a   :  { %2551 = vmatpush3.bf16.msra.mxu0 %v2550_v11 }
 0x78b   :  { %2552 = vmatprep.subr.bf16.mxu0 %v2733_v62 }
 0x78e   :  { %2554 = vmatpush3.bf16.msra.mxu0 %v2553_v8 }
 0x78f   :  { %2555 = vmatprep.subr.bf16.mxu0 %v2733_v62 }
 0x792   :  { %2557 = vmatpush3.bf16.msra.mxu0 %v2556_v15 }
 0x793   :  { %2558 = vmatprep.subr.bf16.mxu0 %v2733_v62 }
 0x796   :  { %2560 = vmatpush3.bf16.msra.mxu0 %v2559_v24 }
 0x797   :  { %2561 = vmatprep.subr.bf16.mxu0 %v2733_v62 }
 0x79a   :  { %2563 = vmatpush3.bf16.msra.mxu0 %v2562_v32 }
 0x850   :  { %v1677_v33 = vpop.f32.mrb[14].mxu0  ;;  %v1748_v38 = vpop.f32.mrb[14].mxu1 }
 0x851   :  { %v1679_v41 = vpop.f32.mrb[15].mxu0  ;;  %v1750_v43 = vpop.f32.mrb[15].mxu1 }
 0x852   :  { %v1757_v45 = vcombine.low %v1677_v33, %v1679_v41  ;;  %v1758_v48 = vcombine.low %v1748_v38, %v1750_v43 }
 0x854   :  { %v1765_v58 = vrot.slane %v1757_v45, %v2950_v61  ;;  %v1772_v59 = vrot.slane %v1758_v48, %v2950_v61 }
 0x856   :  { %v1773_v60 = vcombine.low %v1765_v58, %v1772_v59 }
 0x858   :  { %v1780_v13 = vrot.slane %v1773_v60, %v2950_v61 }
 0x85a   :  { %v1782_v17 = vadd.f32 %v1780_v13, %v1610_v9 }
 0x85c   :  { %v1783_v18 = vmul.f32 %v1782_v17, %v2958_v30  ;;  %v1819_v30 = vld [vmem:[%s3239_s4] sm:$0x1]  ;;  %s2691_s4 = scalar_lea.vmem %s1911_s12, 16 }
 0x85d   :  { %p2692_p13 = scmp.ne.s32.totalorder %s1911_s12, %s2691_s4  ;;  %p2697_p1 = scmp.lt.s32.totalorder %s2695_s13, %s2691_s4 }
 0x85e   :  { %2607 = vtanh.f32 %v1783_v18 }
 0x85f   :  { %p2698_p2 = por %p2697_p1, %p2696_p0 }
 0x861   :  { %p2699_p3 = pnand %p2698_p2, %p2692_p13 }
 0x868   :  { %v2608_v22 = vpop.eup %2607 }
 0x869   :  { %v1785_v26 = vadd.f32 1.0, %v2608_v22  ;;  %v1788_v27 = vrot.slane %v2608_v22, 1  ;;  %v1797_v40 = vrot.slane %v2608_v22, 2  ;;  %v1792_v53 = vrot.slane %v2608_v22, 3 }
 0x86b   :  { %v1786_v31 = vmul.f32 0.5, %v1785_v26  ;;  %v1790_v35 = vadd.f32 1.0, %v1788_v27  ;;  %v1794_v57 = vadd.f32 1.0, %v1792_v53 }
 0x86d   :  { %v1791_v39 = vmul.f32 0.5, %v1790_v35  ;;  %v1799_v51 = vmul.f32 %v1797_v40, %v1786_v31  ;;  %v1795_v63 = vmul.f32 0.5, %v1794_v57 }
 0x86f   :  { %v1796_v44 = vmul.f32 %v1791_v39, %v3211_v20 }
 0x871   :  { %v1800_v52 = vadd.f32 %v1799_v51, %v1796_v44 }
 0x873   :  { %2609 = vtanh.f32 %v1800_v52 }
 0x87d   :  { %v2610_v61 = vpop.eup %2609 }
 0x87e   :  { %v1802_v0 = vmul.f32 %v2610_v61, %v1795_v63 }
 0x880   :  { %2026 = vmatmul.mubr.f32.vlgmr.msra.gmra.mrb[16].mxu0 %v1802_v0 }
 0x953   :  { %v1886_v1 = vpop.f32.mrb[16].mxu0 }
 0x954   :  { %v1887_v6 = vadd.f32 %v1886_v1, %v1819_v30  ;;  %v2027_v16 = vpop.f32.mrb[17].mxu0 }
 0x956   :  { %v1891_v19 = vsel %vm1890_vm1, %v1887_v6, -inf }
 0x957   :  { %1892 = vmax.xlane.f32.xlu0 %v1891_v19 }
 0x9e4   :  { %v1893_v20 = vpop.xlane.xlu0 %1892 }
 0x9e5   :  { %v1894_v25 = vsub.f32 %v1887_v6, %v1893_v20 }
 0x9e7   :  { %v1895_v34 = vmul.f32 1.442695, %v1894_v25 }
 0x9e9   :  { %2611 = vpow2.f32 %v1895_v34 }
 0x9f3   :  { %v2612_v36 = vpop.eup %2611 }
 0x9f4   :  { %v1897_v37 = vsel %vm1890_vm1, %v2612_v36, 0.0 }
 0x9f5   :  { %1898 = vadd.xlane.f32.xlu0 %v1897_v37 }
 0xa82   :  { %v1899_v42 = vpop.xlane.xlu0 %1898 }
 0xa83   :  { %2613 = vlog2.f32 %v1899_v42 }
 0xa8d   :  { %v2614_v46 = vpop.eup %2613 }
 0xa8e   :  { %v1901_v47 = vmul.f32 0.6931472, %v2614_v46 }
 0xa90   :  { %v1902_v49 = vsub.f32 %v1894_v25, %v1901_v47 }
 0xa92   :  { %1903 = vst [vmem:[#allocation10] sm:$0x1] %v1902_v49 }
 0xa93   :  { %2702 = shalt.err (!%p2699_p3)
}
 0xa94   :  { %s2703_s21 = scalar_lea.hbm %s3240_s5, 16 }
 0xa95   :  { %p2704_p4 = scmp.ne.s32.totalorder %s3240_s5, %s2703_s21  ;;  %p2707_p5 = scmp.lt.u32.totalorder %s2703_s21, %s3240_s5 }
 0xa97   :  { %p2709_p6 = pnand %p2707_p5, %p2704_p4 }
 0xa99   :  { %2712 = shalt.err (!%p2709_p6)
}
 0xa9a   :  { %1913 = dma.vmem_to_hbm [thread:$0]  %s1911_s12, 16, %s3240_s5, [#allocation4]  }
 0xa9b   :  { %2719 = dma.done.wait [#allocation4], 16  }
 0xa9c   :  { %2720 = vsyncadd [#allocation4], 4294967280 }
 0xa9d   :  { %1917 = vsyncpa [#allocation3], 1 }
 0xa9e   :  { %1918 = vsyncpa [#allocation8], 1 }
 0xa9f   :  { %1919 = vsyncpa [#allocation4], 1 }
 0xaa0   :  { %1920 = vsyncpa [#allocation5], 1 }

</bundles_post_ra>
